<compile_context>
chip_gen: v6e
topology: v6e:2x2x1
jax: 0.10.0
libtpu: 0.0.40
codegen_flags: <defaults>
</compile_context>

<pallas_src>
import functools

import jax
import jax.numpy as jnp
import numpy as np
from jax.experimental import pallas as pl
from jax.experimental.pallas import tpu as pltpu

SELU_ALPHA = 1.6732632423543772
SELU_SCALE = 1.0507009873554805
BN_EPS = 1e-5

# Plane-grid shifts each input parity plane contributes with (shared by the kernel's
# operand stacking and the host-side weight stacking -> guaranteed consistent order).
_PARITY_SHIFTS = {0: (0, 1), 1: (-1, 0)}
# ConvTranspose2d(k=4, s=2, p=1) polyphase: output parity a uses input shift di with
# kernel row kh, where the mapping {di: kh} is:
_CONVT_TAPS = {0: {0: 1, -1: 3}, 1: {1: 0, 0: 2}}


# ---------------------------------------------------------------------------
# In-kernel helpers (activations live lane-dense as (C, B*H*W))
# ---------------------------------------------------------------------------
def _shifted(x, di, dj, m_ref, width):
    """y[:, n] = x[:, n + di*width + dj]; invalid neighbours zeroed by the tap mask."""
    if di == 0 and dj == 0:
        return x                                  # (0,0) mask is all-ones
    n = x.shape[1]
    shift = (-(di * width + dj)) % n              # non-negative, jnp.roll convention
    if n % 128 == 0:
        xs = pltpu.roll(x, shift, axis=1)         # circular; wrapped lanes get masked
    else:
        xs = jnp.concatenate([x[:, n - shift:], x[:, :n - shift]], axis=1)
    return xs * m_ref[(di + 1) * 3 + (dj + 1)]


def _shift_stack9(x, m_ref, width):
    """Stack the 9 unique (dh, dw) shifted+masked copies along the channel axis."""
    return jnp.concatenate(
        [_shifted(x, di, dj, m_ref, width) for di in (-1, 0, 1) for dj in (-1, 0, 1)],
        axis=0)


def _bn_selu(y, gamma, beta):
    """Training-mode BatchNorm2d (biased stats over the lane axis) + SELU."""
    inv_n = 1.0 / y.shape[1]
    mean = jnp.sum(y, axis=1, keepdims=True) * inv_n
    var = jnp.sum(y * y, axis=1, keepdims=True) * inv_n - mean * mean
    y = (y - mean) * jax.lax.rsqrt(var + BN_EPS)
    y = y * gamma + beta
    return SELU_SCALE * jnp.where(y > 0, y, SELU_ALPHA * (jnp.exp(y) - 1.0))


# ---------------------------------------------------------------------------
# The single fused kernel
# ---------------------------------------------------------------------------
def _generator_kernel(xk_ref, w1_ref, g1_ref, b1_ref,
                      wct1_ref, m4_ref, g2_ref, b2_ref, sel_ref,
                      wc1_ref, m8_ref, g3_ref, b3_ref,
                      wct2_ref, wco_ref, out_ref):
    # 1) first ConvT (1x1 -> 4x4): one GEMM thanks to the kron'd latent, + BN + SELU
    a1 = jnp.dot(w1_ref[...], xk_ref[...], preferred_element_type=jnp.float32)
    a1 = _bn_selu(a1, g1_ref[...], b1_ref[...])                          # (C0, B*16)

    # 2) ConvT(C0->C1, k4 s2 p1): one stacked-K polyphase GEMM -> 4 parity planes
    xs = _shift_stack9(a1, m4_ref, width=4)                              # (9*C0, B*16)
    yp = jnp.dot(wct1_ref[...], xs, preferred_element_type=jnp.float32)  # (4*C1, B*16)
    c1 = yp.shape[0] // 4
    ycat = jnp.concatenate([yp[p * c1:(p + 1) * c1] for p in range(4)], axis=1)
    ycat = _bn_selu(ycat, g2_ref[...], b2_ref[...])                      # (C1, 4*B*16)
    a2 = jnp.dot(ycat, sel_ref[...], preferred_element_type=jnp.float32)  # (C1, B*64)

    # 3) Conv(C1->C1, 3x3 p1): one stacked-K GEMM + BN + SELU
    xs = _shift_stack9(a2, m8_ref, width=8)                              # (9*C1, B*64)
    a3 = jnp.dot(wc1_ref[...], xs, preferred_element_type=jnp.float32)
    a3 = _bn_selu(a3, g3_ref[...], b3_ref[...])                          # (C1, B*64)

    # 4) ConvT_Out(C1->CG, k4 s2 p1): one stacked-K polyphase GEMM (no BN)
    xs = _shift_stack9(a3, m8_ref, width=8)                              # (9*C1, B*64)
    y4 = jnp.dot(wct2_ref[...], xs, preferred_element_type=jnp.float32)  # (4*CG, B*64)
    cg = y4.shape[0] // 4

    # 5) Conv_Out(CG->NC, 3x3 p1) on the interleaved 16x16 grid, evaluated directly in
    #    parity-plane form (no in-kernel interleave), then Tanh.  16 unique
    #    (plane, shift) operands, one GEMM with K = 16*CG.
    ops = []
    for ai in (0, 1):
        for bi in (0, 1):
            plane = y4[(ai * 2 + bi) * cg:(ai * 2 + bi + 1) * cg]        # (CG, B*64)
            for di in _PARITY_SHIFTS[ai]:
                for dj in _PARITY_SHIFTS[bi]:
                    ops.append(_shifted(plane, di, dj, m8_ref, width=8))
    xs = jnp.concatenate(ops, axis=0)                                    # (16*CG, B*64)
    out = jnp.dot(wco_ref[...], xs, preferred_element_type=jnp.float32)  # (4*NC, B*64)
    out_ref[...] = jnp.tanh(out)


# ---------------------------------------------------------------------------
# Trace-time constants & stacked-weight preparation (tiny, outside the kernel)
# ---------------------------------------------------------------------------
def _tap_masks(batch, h, w):
    """(9, 1, B*H*W) validity of neighbour (dh, dw) under zero padding."""
    r = np.arange(h)[:, None]
    c = np.arange(w)[None, :]
    rows = []
    for dh in (-1, 0, 1):
        for dw in (-1, 0, 1):
            ok = (r + dh >= 0) & (r + dh < h) & (c + dw >= 0) & (c + dw < w)
            rows.append(np.broadcast_to(ok, (batch, h, w)).reshape(1, batch * h * w))
    return jnp.asarray(np.stack(rows, 0).astype(np.float32))


def _interleave_selection(batch, h, w):
    """0/1 matrix mapping lane-concatenated parity planes -> interleaved (2h, 2w)."""
    n = batch * h * w
    s = np.zeros((4 * n, 4 * n), np.float32)
    for a in (0, 1):
        for b2 in (0, 1):
            p = a * 2 + b2
            for b in range(batch):
                for i in range(h):
                    for j in range(w):
                        row = p * n + (b * h + i) * w + j
                        col = (b * 2 * h + 2 * i + a) * 2 * w + (2 * j + b2)
                        s[row, col] = 1.0
    return jnp.asarray(s)


def _stack_conv3x3(w):
    """(Cout, Cin, 3, 3) -> (Cout, 9*Cin), K blocks ordered by (dh, dw)."""
    cout, cin = w.shape[:2]
    return jnp.transpose(w, (0, 2, 3, 1)).reshape(cout, 9 * cin)


def _stack_convt4x4(w_ct):
    """Torch ConvT weight (Cin, Cout, 4, 4) -> polyphase-stacked (4*Cout, 9*Cin)."""
    cin, cout = w_ct.shape[:2]
    w = jnp.transpose(w_ct, (1, 0, 2, 3))                     # (Cout, Cin, 4, 4)
    zero = jnp.zeros((cout, cin), jnp.float32)
    planes = []
    for a in (0, 1):
        for b in (0, 1):
            blocks = []
            for di in (-1, 0, 1):
                for dj in (-1, 0, 1):
                    if di in _CONVT_TAPS[a] and dj in _CONVT_TAPS[b]:
                        blocks.append(w[:, :, _CONVT_TAPS[a][di], _CONVT_TAPS[b][dj]])
                    else:
                        blocks.append(zero)
            planes.append(jnp.concatenate(blocks, axis=1))    # (Cout, 9*Cin)
    return jnp.concatenate(planes, axis=0)                    # (4*Cout, 9*Cin)


def _stack_parity_conv3x3(w):
    """(NC, CG, 3, 3) 3x3 conv on the interleaved grid -> (4*NC, 16*CG) parity form."""
    nc, cg = w.shape[:2]
    zero = jnp.zeros((nc, cg), jnp.float32)

    def split(a, d):          # interleaved offset d from output parity a -> (a', di)
        ap = (a + d) % 2
        return ap, (a + d - ap) // 2

    out_blocks = []
    for a in (0, 1):
        for b in (0, 1):
            blocks = [zero] * 16
            for dr in (-1, 0, 1):
                ap, di = split(a, dr)
                for dc in (-1, 0, 1):
                    bp, dj = split(b, dc)
                    q = ap * 2 + bp
                    t = _PARITY_SHIFTS[ap].index(di) * 2 + _PARITY_SHIFTS[bp].index(dj)
                    blocks[q * 4 + t] = w[:, :, dr + 1, dc + 1]
            out_blocks.append(jnp.concatenate(blocks, axis=1))  # (NC, 16*CG)
    return jnp.concatenate(out_blocks, axis=0)                  # (4*NC, 16*CG)


# ---------------------------------------------------------------------------
# Generator: parameter init + forward
# ---------------------------------------------------------------------------
def init_generator_params(key, image_size, z_size, G_h_size, n_colors):
    mult = image_size // 8
    keys = iter(jax.random.split(key, 128))

    def rnd(shape, scale=0.1):
        return scale * jax.random.normal(next(keys), shape, jnp.float32)

    def bn(c):
        return dict(gamma=1.0 + rnd((c,), 0.05), beta=rnd((c,), 0.05))

    params = {}
    c_first = G_h_size * mult
    params["first"] = dict(w=rnd((z_size, c_first, 4, 4)), **bn(c_first))

    blocks = []
    m = mult
    while m > 1:
        cin = G_h_size * m
        cout = G_h_size * (m // 2)
        blocks.append(dict(
            w_ct=rnd((cin, cout, 4, 4)),
            bn1=bn(cout),
            w_conv=rnd((cout, cout, 3, 3)),
            bn2=bn(cout),
        ))
        m //= 2
    params["blocks"] = blocks
    params["w_ct_out"] = rnd((G_h_size, G_h_size, 4, 4))
    params["w_conv_out"] = rnd((n_colors, G_h_size, 3, 3))
    return params


def generator_forward(x_nchw, params):
    """x: (B, z_size, 1, 1) -> (B, n_colors, 16, 16) via ONE fused Pallas kernel."""
    if len(params["blocks"]) != 1:
        # TODO(synk): chain additional fused segments for image_size > 16.
        raise NotImplementedError("fused pipeline implemented for image_size == 16")

    f32 = jnp.float32
    B, z = x_nchw.shape[0], x_nchw.shape[1]
    blk = params["blocks"][0]
    w1 = params["first"]["w"].astype(f32)                    # (z, C0, 4, 4) torch ConvT
    C0 = w1.shape[1]
    C1 = blk["w_ct"].shape[1]
    CG = params["w_ct_out"].shape[1]
    NC = params["w_conv_out"].shape[0]

    # latent -> kron(x^T, I16): turns the first ConvT into one in-kernel GEMM
    x2 = x_nchw.reshape(B, z).astype(f32)
    xkron = jnp.kron(x2.T, jnp.eye(16, dtype=f32))           # (z*16, B*16)

    # stacked-K weights, prepared once at trace time (constant-folded by XLA)
    w1big = jnp.transpose(w1, (1, 0, 2, 3)).reshape(C0, z * 16)
    wct1s = _stack_convt4x4(blk["w_ct"].astype(f32))                # (4*C1, 9*C0)
    wc1s = _stack_conv3x3(blk["w_conv"].astype(f32))                # (C1, 9*C1)
    wct2s = _stack_convt4x4(params["w_ct_out"].astype(f32))         # (4*CG, 9*C1)
    wcos = _stack_parity_conv3x3(params["w_conv_out"].astype(f32))  # (4*NC, 16*CG)

    g1 = params["first"]["gamma"].reshape(C0, 1).astype(f32)
    b1 = params["first"]["beta"].reshape(C0, 1).astype(f32)
    g2 = blk["bn1"]["gamma"].reshape(C1, 1).astype(f32)
    b2 = blk["bn1"]["beta"].reshape(C1, 1).astype(f32)
    g3 = blk["bn2"]["gamma"].reshape(C1, 1).astype(f32)
    b3 = blk["bn2"]["beta"].reshape(C1, 1).astype(f32)

    # shape-only constants (tap validity masks, 4x4 -> 8x8 parity interleave)
    m4 = _tap_masks(B, 4, 4)
    m8 = _tap_masks(B, 8, 8)
    sel = _interleave_selection(B, 4, 4)                      # (4*B*16, B*64), 64 KB

    out = pl.pallas_call(
        _generator_kernel,
        out_shape=jax.ShapeDtypeStruct((4 * NC, B * 64), f32),
    )(xkron, w1big, g1, b1, wct1s, m4, g2, b2, sel, wc1s, m8, g3, b3, wct2s, wcos)

    # parity planes -> NCHW 16x16 (KB-scale glue riding on the required final transpose)
    out = out.reshape(2, 2, NC, B, 8, 8)
    return jnp.transpose(out, (3, 2, 4, 0, 5, 1)).reshape(B, NC, 16, 16)


# ---------------------------------------------------------------------------
# Pure-JAX reference (PyTorch train-mode semantics) for correctness validation
# ---------------------------------------------------------------------------
def _reference_forward(x, params):
    f32 = jnp.float32
    x = x.astype(f32)

    def convt(h, w, stride, pad):
        k = w.shape[2]
        w_f = jnp.transpose(w[:, :, ::-1, ::-1], (1, 0, 2, 3))   # flipped, OIHW
        return jax.lax.conv_general_dilated(
            h, w_f, window_strides=(1, 1),
            padding=[(k - 1 - pad, k - 1 - pad)] * 2,
            lhs_dilation=(stride, stride),
            dimension_numbers=("NCHW", "OIHW", "NCHW"))

    def conv(h, w, pad):
        return jax.lax.conv_general_dilated(
            h, w, window_strides=(1, 1), padding=[(pad, pad)] * 2,
            dimension_numbers=("NCHW", "OIHW", "NCHW"))

    def bn_selu(h, gamma, beta):
        mean = jnp.mean(h, axis=(0, 2, 3), keepdims=True)
        var = jnp.mean(jnp.square(h - mean), axis=(0, 2, 3), keepdims=True)
        y = (h - mean) / jnp.sqrt(var + BN_EPS)
        y = y * gamma.reshape(1, -1, 1, 1) + beta.reshape(1, -1, 1, 1)
        return SELU_SCALE * jnp.where(y > 0, y, SELU_ALPHA * (jnp.exp(y) - 1.0))

    h = convt(x, params["first"]["w"].astype(f32), 1, 0)
    h = bn_selu(h, params["first"]["gamma"], params["first"]["beta"])
    for blk in params["blocks"]:
        h = convt(h, blk["w_ct"].astype(f32), 2, 1)
        h = bn_selu(h, blk["bn1"]["gamma"], blk["bn1"]["beta"])
        h = conv(h, blk["w_conv"].astype(f32), 1)
        h = bn_selu(h, blk["bn2"]["gamma"], blk["bn2"]["beta"])
    h = convt(h, params["w_ct_out"].astype(f32), 2, 1)
    h = conv(h, params["w_conv_out"].astype(f32), 1)
    return jnp.tanh(h)


# ---------------------------------------------------------------------------
if __name__ == "__main__":
    IMAGE_SIZE, Z_SIZE, G_H_SIZE, N_COLORS, BATCH = 16, 8, 8, 3, 2

    key = jax.random.PRNGKey(0)
    k_param, k_x = jax.random.split(key)
    params = init_generator_params(k_param, IMAGE_SIZE, Z_SIZE, G_H_SIZE, N_COLORS)
    x = jax.random.normal(k_x, (BATCH, Z_SIZE, 1, 1), jnp.float32)

    fwd = jax.jit(functools.partial(generator_forward, params=params))
    out = fwd(x)
    jax.block_until_ready(out)

    assert out.shape == (BATCH, N_COLORS, IMAGE_SIZE, IMAGE_SIZE), out.shape
    assert bool(jnp.all(jnp.isfinite(out)))

    ref = _reference_forward(x, params)
    err = float(jnp.max(jnp.abs(out - ref)))
    assert err < 2e-3, f"max |kernel - reference| = {err}"
    print("KERNEL_OK")
</pallas_src>

<mosaic_0001>
module attributes {stable_mosaic.version = 11 : i64} {
  func.func @_generator_kernel(%arg0: memref<128x32xf32, #tpu.memory_space<vmem>>, %arg1: memref<16x128xf32, #tpu.memory_space<vmem>>, %arg2: memref<16x1xf32, #tpu.memory_space<vmem>>, %arg3: memref<16x1xf32, #tpu.memory_space<vmem>>, %arg4: memref<32x144xf32, #tpu.memory_space<vmem>>, %arg5: memref<9x1x32xf32, #tpu.memory_space<vmem>>, %arg6: memref<8x1xf32, #tpu.memory_space<vmem>>, %arg7: memref<8x1xf32, #tpu.memory_space<vmem>>, %arg8: memref<128x128xf32, #tpu.memory_space<vmem>>, %arg9: memref<8x72xf32, #tpu.memory_space<vmem>>, %arg10: memref<9x1x128xf32, #tpu.memory_space<vmem>>, %arg11: memref<8x1xf32, #tpu.memory_space<vmem>>, %arg12: memref<8x1xf32, #tpu.memory_space<vmem>>, %arg13: memref<32x72xf32, #tpu.memory_space<vmem>>, %arg14: memref<12x128xf32, #tpu.memory_space<vmem>>, %arg15: memref<12x128xf32, #tpu.memory_space<vmem>>) attributes {dimension_semantics = [], scalar_prefetch = 0 : i64, scratch_operands = 0 : i64, tpu.core_type = #tpu.core_type<tc>} {
    %c0 = arith.constant 0 : index
    %c0_0 = arith.constant 0 : index
    %0 = vector.load %arg1[%c0, %c0_0] : memref<16x128xf32, #tpu.memory_space<vmem>>, vector<16x128xf32>
    %c0_1 = arith.constant 0 : index
    %c0_2 = arith.constant 0 : index
    %1 = vector.load %arg0[%c0_1, %c0_2] : memref<128x32xf32, #tpu.memory_space<vmem>>, vector<128x32xf32>
    %cst = arith.constant dense<0.000000e+00> : vector<16x32xf32>
    %2 = tpu.matmul %0, %1, %cst {dimension_numbers = #tpu.dot_dimension_numbers<[1], [0], [0], [1], [0, 0, 1, 1], [], []>} : vector<16x128xf32>, vector<128x32xf32>, vector<16x32xf32> -> vector<16x32xf32>
    %c0_3 = arith.constant 0 : index
    %c0_4 = arith.constant 0 : index
    %3 = vector.load %arg2[%c0_3, %c0_4] : memref<16x1xf32, #tpu.memory_space<vmem>>, vector<16x1xf32>
    %c0_5 = arith.constant 0 : index
    %c0_6 = arith.constant 0 : index
    %4 = vector.load %arg3[%c0_5, %c0_6] : memref<16x1xf32, #tpu.memory_space<vmem>>, vector<16x1xf32>
    %cst_7 = arith.constant dense<0.000000e+00> : vector<16xf32>
    %5 = vector.multi_reduction <add>, %2, %cst_7 [1] : vector<16x32xf32> to vector<16xf32>
    %6 = vector.shape_cast %5 : vector<16xf32> to vector<16x1xf32>
    %cst_8 = arith.constant 3.125000e-02 : f32
    %7 = vector.broadcast %cst_8 : f32 to vector<16x1xf32>
    %8 = arith.mulf %6, %7 : vector<16x1xf32>
    %9 = arith.mulf %2, %2 : vector<16x32xf32>
    %cst_9 = arith.constant dense<0.000000e+00> : vector<16xf32>
    %10 = vector.multi_reduction <add>, %9, %cst_9 [1] : vector<16x32xf32> to vector<16xf32>
    %11 = vector.shape_cast %10 : vector<16xf32> to vector<16x1xf32>
    %cst_10 = arith.constant 3.125000e-02 : f32
    %12 = vector.broadcast %cst_10 : f32 to vector<16x1xf32>
    %13 = arith.mulf %11, %12 : vector<16x1xf32>
    %14 = arith.mulf %8, %8 : vector<16x1xf32>
    %15 = arith.subf %13, %14 : vector<16x1xf32>
    %16 = vector.broadcast %8 : vector<16x1xf32> to vector<16x32xf32>
    %17 = arith.subf %2, %16 : vector<16x32xf32>
    %cst_11 = arith.constant 9.99999974E-6 : f32
    %18 = vector.broadcast %cst_11 : f32 to vector<16x1xf32>
    %19 = arith.addf %15, %18 : vector<16x1xf32>
    %20 = math.rsqrt %19 : vector<16x1xf32>
    %21 = vector.broadcast %20 : vector<16x1xf32> to vector<16x32xf32>
    %22 = arith.mulf %17, %21 : vector<16x32xf32>
    %23 = vector.broadcast %3 : vector<16x1xf32> to vector<16x32xf32>
    %24 = arith.mulf %22, %23 : vector<16x32xf32>
    %25 = vector.broadcast %4 : vector<16x1xf32> to vector<16x32xf32>
    %26 = arith.addf %24, %25 : vector<16x32xf32>
    %cst_12 = arith.constant 0.000000e+00 : f32
    %27 = vector.broadcast %cst_12 : f32 to vector<16x32xf32>
    %28 = arith.cmpf ogt, %26, %27 : vector<16x32xf32>
    %29 = math.exp %26 : vector<16x32xf32>
    %cst_13 = arith.constant 1.000000e+00 : f32
    %30 = vector.broadcast %cst_13 : f32 to vector<16x32xf32>
    %31 = arith.subf %29, %30 : vector<16x32xf32>
    %cst_14 = arith.constant 1.67326319 : f32
    %32 = vector.broadcast %cst_14 : f32 to vector<16x32xf32>
    %33 = arith.mulf %32, %31 : vector<16x32xf32>
    %34 = arith.select %28, %26, %33 : vector<16x32xi1>, vector<16x32xf32>
    %cst_15 = arith.constant 1.05070102 : f32
    %35 = vector.broadcast %cst_15 : f32 to vector<16x32xf32>
    %36 = arith.mulf %35, %34 : vector<16x32xf32>
    %37 = vector.extract_strided_slice %36 {offsets = [0, 27], sizes = [16, 5], strides = [1, 1]} : vector<16x32xf32> to vector<16x5xf32>
    %38 = vector.extract_strided_slice %36 {offsets = [0, 0], sizes = [16, 27], strides = [1, 1]} : vector<16x32xf32> to vector<16x27xf32>
    %39 = tpu.concatenate %37, %38 in 1 : vector<16x5xf32>, vector<16x27xf32> -> vector<16x32xf32>
    %c0_16 = arith.constant 0 : index
    %c0_17 = arith.constant 0 : index
    %c0_18 = arith.constant 0 : index
    %40 = vector.load %arg5[%c0_16, %c0_17, %c0_18] : memref<9x1x32xf32, #tpu.memory_space<vmem>>, vector<1x1x32xf32>
    %41 = vector.shape_cast %40 : vector<1x1x32xf32> to vector<1x32xf32>
    %42 = vector.broadcast %41 : vector<1x32xf32> to vector<16x32xf32>
    %43 = arith.mulf %39, %42 : vector<16x32xf32>
    %44 = vector.extract_strided_slice %36 {offsets = [0, 28], sizes = [16, 4], strides = [1, 1]} : vector<16x32xf32> to vector<16x4xf32>
    %45 = vector.extract_strided_slice %36 {offsets = [0, 0], sizes = [16, 28], strides = [1, 1]} : vector<16x32xf32> to vector<16x28xf32>
    %46 = tpu.concatenate %44, %45 in 1 : vector<16x4xf32>, vector<16x28xf32> -> vector<16x32xf32>
    %c1 = arith.constant 1 : index
    %c0_19 = arith.constant 0 : index
    %c0_20 = arith.constant 0 : index
    %47 = vector.load %arg5[%c1, %c0_19, %c0_20] : memref<9x1x32xf32, #tpu.memory_space<vmem>>, vector<1x1x32xf32>
    %48 = vector.shape_cast %47 : vector<1x1x32xf32> to vector<1x32xf32>
    %49 = vector.broadcast %48 : vector<1x32xf32> to vector<16x32xf32>
    %50 = arith.mulf %46, %49 : vector<16x32xf32>
    %51 = vector.extract_strided_slice %36 {offsets = [0, 29], sizes = [16, 3], strides = [1, 1]} : vector<16x32xf32> to vector<16x3xf32>
    %52 = vector.extract_strided_slice %36 {offsets = [0, 0], sizes = [16, 29], strides = [1, 1]} : vector<16x32xf32> to vector<16x29xf32>
    %53 = tpu.concatenate %51, %52 in 1 : vector<16x3xf32>, vector<16x29xf32> -> vector<16x32xf32>
    %c2 = arith.constant 2 : index
    %c0_21 = arith.constant 0 : index
    %c0_22 = arith.constant 0 : index
    %54 = vector.load %arg5[%c2, %c0_21, %c0_22] : memref<9x1x32xf32, #tpu.memory_space<vmem>>, vector<1x1x32xf32>
    %55 = vector.shape_cast %54 : vector<1x1x32xf32> to vector<1x32xf32>
    %56 = vector.broadcast %55 : vector<1x32xf32> to vector<16x32xf32>
    %57 = arith.mulf %53, %56 : vector<16x32xf32>
    %58 = vector.extract_strided_slice %36 {offsets = [0, 31], sizes = [16, 1], strides = [1, 1]} : vector<16x32xf32> to vector<16x1xf32>
    %59 = vector.extract_strided_slice %36 {offsets = [0, 0], sizes = [16, 31], strides = [1, 1]} : vector<16x32xf32> to vector<16x31xf32>
    %60 = tpu.concatenate %58, %59 in 1 : vector<16x1xf32>, vector<16x31xf32> -> vector<16x32xf32>
    %c3 = arith.constant 3 : index
    %c0_23 = arith.constant 0 : index
    %c0_24 = arith.constant 0 : index
    %61 = vector.load %arg5[%c3, %c0_23, %c0_24] : memref<9x1x32xf32, #tpu.memory_space<vmem>>, vector<1x1x32xf32>
    %62 = vector.shape_cast %61 : vector<1x1x32xf32> to vector<1x32xf32>
    %63 = vector.broadcast %62 : vector<1x32xf32> to vector<16x32xf32>
    %64 = arith.mulf %60, %63 : vector<16x32xf32>
    %65 = vector.extract_strided_slice %36 {offsets = [0, 1], sizes = [16, 31], strides = [1, 1]} : vector<16x32xf32> to vector<16x31xf32>
    %66 = vector.extract_strided_slice %36 {offsets = [0, 0], sizes = [16, 1], strides = [1, 1]} : vector<16x32xf32> to vector<16x1xf32>
    %67 = tpu.concatenate %65, %66 in 1 : vector<16x31xf32>, vector<16x1xf32> -> vector<16x32xf32>
    %c5 = arith.constant 5 : index
    %c0_25 = arith.constant 0 : index
    %c0_26 = arith.constant 0 : index
    %68 = vector.load %arg5[%c5, %c0_25, %c0_26] : memref<9x1x32xf32, #tpu.memory_space<vmem>>, vector<1x1x32xf32>
    %69 = vector.shape_cast %68 : vector<1x1x32xf32> to vector<1x32xf32>
    %70 = vector.broadcast %69 : vector<1x32xf32> to vector<16x32xf32>
    %71 = arith.mulf %67, %70 : vector<16x32xf32>
    %72 = vector.extract_strided_slice %36 {offsets = [0, 3], sizes = [16, 29], strides = [1, 1]} : vector<16x32xf32> to vector<16x29xf32>
    %73 = vector.extract_strided_slice %36 {offsets = [0, 0], sizes = [16, 3], strides = [1, 1]} : vector<16x32xf32> to vector<16x3xf32>
    %74 = tpu.concatenate %72, %73 in 1 : vector<16x29xf32>, vector<16x3xf32> -> vector<16x32xf32>
    %c6 = arith.constant 6 : index
    %c0_27 = arith.constant 0 : index
    %c0_28 = arith.constant 0 : index
    %75 = vector.load %arg5[%c6, %c0_27, %c0_28] : memref<9x1x32xf32, #tpu.memory_space<vmem>>, vector<1x1x32xf32>
    %76 = vector.shape_cast %75 : vector<1x1x32xf32> to vector<1x32xf32>
    %77 = vector.broadcast %76 : vector<1x32xf32> to vector<16x32xf32>
    %78 = arith.mulf %74, %77 : vector<16x32xf32>
    %79 = vector.extract_strided_slice %36 {offsets = [0, 4], sizes = [16, 28], strides = [1, 1]} : vector<16x32xf32> to vector<16x28xf32>
    %80 = vector.extract_strided_slice %36 {offsets = [0, 0], sizes = [16, 4], strides = [1, 1]} : vector<16x32xf32> to vector<16x4xf32>
    %81 = tpu.concatenate %79, %80 in 1 : vector<16x28xf32>, vector<16x4xf32> -> vector<16x32xf32>
    %c7 = arith.constant 7 : index
    %c0_29 = arith.constant 0 : index
    %c0_30 = arith.constant 0 : index
    %82 = vector.load %arg5[%c7, %c0_29, %c0_30] : memref<9x1x32xf32, #tpu.memory_space<vmem>>, vector<1x1x32xf32>
    %83 = vector.shape_cast %82 : vector<1x1x32xf32> to vector<1x32xf32>
    %84 = vector.broadcast %83 : vector<1x32xf32> to vector<16x32xf32>
    %85 = arith.mulf %81, %84 : vector<16x32xf32>
    %86 = vector.extract_strided_slice %36 {offsets = [0, 5], sizes = [16, 27], strides = [1, 1]} : vector<16x32xf32> to vector<16x27xf32>
    %87 = vector.extract_strided_slice %36 {offsets = [0, 0], sizes = [16, 5], strides = [1, 1]} : vector<16x32xf32> to vector<16x5xf32>
    %88 = tpu.concatenate %86, %87 in 1 : vector<16x27xf32>, vector<16x5xf32> -> vector<16x32xf32>
    %c8 = arith.constant 8 : index
    %c0_31 = arith.constant 0 : index
    %c0_32 = arith.constant 0 : index
    %89 = vector.load %arg5[%c8, %c0_31, %c0_32] : memref<9x1x32xf32, #tpu.memory_space<vmem>>, vector<1x1x32xf32>
    %90 = vector.shape_cast %89 : vector<1x1x32xf32> to vector<1x32xf32>
    %91 = vector.broadcast %90 : vector<1x32xf32> to vector<16x32xf32>
    %92 = arith.mulf %88, %91 : vector<16x32xf32>
    %93 = tpu.concatenate %43, %50, %57, %64, %36, %71, %78, %85, %92 in 0 : vector<16x32xf32>, vector<16x32xf32>, vector<16x32xf32>, vector<16x32xf32>, vector<16x32xf32>, vector<16x32xf32>, vector<16x32xf32>, vector<16x32xf32>, vector<16x32xf32> -> vector<144x32xf32>
    %c0_33 = arith.constant 0 : index
    %c0_34 = arith.constant 0 : index
    %94 = vector.load %arg4[%c0_33, %c0_34] : memref<32x144xf32, #tpu.memory_space<vmem>>, vector<32x144xf32>
    %cst_35 = arith.constant dense<0.000000e+00> : vector<32x32xf32>
    %95 = tpu.matmul %94, %93, %cst_35 {dimension_numbers = #tpu.dot_dimension_numbers<[1], [0], [0], [1], [0, 0, 1, 1], [], []>} : vector<32x144xf32>, vector<144x32xf32>, vector<32x32xf32> -> vector<32x32xf32>
    %96 = vector.extract_strided_slice %95 {offsets = [0, 0], sizes = [8, 32], strides = [1, 1]} : vector<32x32xf32> to vector<8x32xf32>
    %97 = vector.extract_strided_slice %95 {offsets = [8, 0], sizes = [8, 32], strides = [1, 1]} : vector<32x32xf32> to vector<8x32xf32>
    %98 = vector.extract_strided_slice %95 {offsets = [16, 0], sizes = [8, 32], strides = [1, 1]} : vector<32x32xf32> to vector<8x32xf32>
    %99 = vector.extract_strided_slice %95 {offsets = [24, 0], sizes = [8, 32], strides = [1, 1]} : vector<32x32xf32> to vector<8x32xf32>
    %100 = tpu.concatenate %96, %97, %98, %99 in 1 : vector<8x32xf32>, vector<8x32xf32>, vector<8x32xf32>, vector<8x32xf32> -> vector<8x128xf32>
    %c0_36 = arith.constant 0 : index
    %c0_37 = arith.constant 0 : index
    %101 = vector.load %arg6[%c0_36, %c0_37] : memref<8x1xf32, #tpu.memory_space<vmem>>, vector<8x1xf32>
    %c0_38 = arith.constant 0 : index
    %c0_39 = arith.constant 0 : index
    %102 = vector.load %arg7[%c0_38, %c0_39] : memref<8x1xf32, #tpu.memory_space<vmem>>, vector<8x1xf32>
    %cst_40 = arith.constant dense<0.000000e+00> : vector<8xf32>
    %103 = vector.multi_reduction <add>, %100, %cst_40 [1] : vector<8x128xf32> to vector<8xf32>
    %104 = vector.shape_cast %103 : vector<8xf32> to vector<8x1xf32>
    %cst_41 = arith.constant 7.812500e-03 : f32
    %105 = vector.broadcast %cst_41 : f32 to vector<8x1xf32>
    %106 = arith.mulf %104, %105 : vector<8x1xf32>
    %107 = arith.mulf %100, %100 : vector<8x128xf32>
    %cst_42 = arith.constant dense<0.000000e+00> : vector<8xf32>
    %108 = vector.multi_reduction <add>, %107, %cst_42 [1] : vector<8x128xf32> to vector<8xf32>
    %109 = vector.shape_cast %108 : vector<8xf32> to vector<8x1xf32>
    %cst_43 = arith.constant 7.812500e-03 : f32
    %110 = vector.broadcast %cst_43 : f32 to vector<8x1xf32>
    %111 = arith.mulf %109, %110 : vector<8x1xf32>
    %112 = arith.mulf %106, %106 : vector<8x1xf32>
    %113 = arith.subf %111, %112 : vector<8x1xf32>
    %114 = vector.broadcast %106 : vector<8x1xf32> to vector<8x128xf32>
    %115 = arith.subf %100, %114 : vector<8x128xf32>
    %cst_44 = arith.constant 9.99999974E-6 : f32
    %116 = vector.broadcast %cst_44 : f32 to vector<8x1xf32>
    %117 = arith.addf %113, %116 : vector<8x1xf32>
    %118 = math.rsqrt %117 : vector<8x1xf32>
    %119 = vector.broadcast %118 : vector<8x1xf32> to vector<8x128xf32>
    %120 = arith.mulf %115, %119 : vector<8x128xf32>
    %121 = vector.broadcast %101 : vector<8x1xf32> to vector<8x128xf32>
    %122 = arith.mulf %120, %121 : vector<8x128xf32>
    %123 = vector.broadcast %102 : vector<8x1xf32> to vector<8x128xf32>
    %124 = arith.addf %122, %123 : vector<8x128xf32>
    %cst_45 = arith.constant 0.000000e+00 : f32
    %125 = vector.broadcast %cst_45 : f32 to vector<8x128xf32>
    %126 = arith.cmpf ogt, %124, %125 : vector<8x128xf32>
    %127 = math.exp %124 : vector<8x128xf32>
    %cst_46 = arith.constant 1.000000e+00 : f32
    %128 = vector.broadcast %cst_46 : f32 to vector<8x128xf32>
    %129 = arith.subf %127, %128 : vector<8x128xf32>
    %cst_47 = arith.constant 1.67326319 : f32
    %130 = vector.broadcast %cst_47 : f32 to vector<8x128xf32>
    %131 = arith.mulf %130, %129 : vector<8x128xf32>
    %132 = arith.select %126, %124, %131 : vector<8x128xi1>, vector<8x128xf32>
    %cst_48 = arith.constant 1.05070102 : f32
    %133 = vector.broadcast %cst_48 : f32 to vector<8x128xf32>
    %134 = arith.mulf %133, %132 : vector<8x128xf32>
    %c0_49 = arith.constant 0 : index
    %c0_50 = arith.constant 0 : index
    %135 = vector.load %arg8[%c0_49, %c0_50] : memref<128x128xf32, #tpu.memory_space<vmem>>, vector<128x128xf32>
    %cst_51 = arith.constant dense<0.000000e+00> : vector<8x128xf32>
    %136 = tpu.matmul %134, %135, %cst_51 {dimension_numbers = #tpu.dot_dimension_numbers<[1], [0], [0], [1], [0, 0, 1, 1], [], []>} : vector<8x128xf32>, vector<128x128xf32>, vector<8x128xf32> -> vector<8x128xf32>
    %c9_i32 = arith.constant 9 : i32
    %137 = tpu.dynamic_rotate %136 by %c9_i32 dim 1 : vector<8x128xf32>, i32 -> vector<8x128xf32>
    %c0_52 = arith.constant 0 : index
    %c0_53 = arith.constant 0 : index
    %c0_54 = arith.constant 0 : index
    %138 = vector.load %arg10[%c0_52, %c0_53, %c0_54] : memref<9x1x128xf32, #tpu.memory_space<vmem>>, vector<1x1x128xf32>
    %139 = vector.shape_cast %138 : vector<1x1x128xf32> to vector<1x128xf32>
    %140 = vector.broadcast %139 : vector<1x128xf32> to vector<8x128xf32>
    %141 = arith.mulf %137, %140 : vector<8x128xf32>
    %c8_i32 = arith.constant 8 : i32
    %142 = tpu.dynamic_rotate %136 by %c8_i32 dim 1 : vector<8x128xf32>, i32 -> vector<8x128xf32>
    %c1_55 = arith.constant 1 : index
    %c0_56 = arith.constant 0 : index
    %c0_57 = arith.constant 0 : index
    %143 = vector.load %arg10[%c1_55, %c0_56, %c0_57] : memref<9x1x128xf32, #tpu.memory_space<vmem>>, vector<1x1x128xf32>
    %144 = vector.shape_cast %143 : vector<1x1x128xf32> to vector<1x128xf32>
    %145 = vector.broadcast %144 : vector<1x128xf32> to vector<8x128xf32>
    %146 = arith.mulf %142, %145 : vector<8x128xf32>
    %c7_i32 = arith.constant 7 : i32
    %147 = tpu.dynamic_rotate %136 by %c7_i32 dim 1 : vector<8x128xf32>, i32 -> vector<8x128xf32>
    %c2_58 = arith.constant 2 : index
    %c0_59 = arith.constant 0 : index
    %c0_60 = arith.constant 0 : index
    %148 = vector.load %arg10[%c2_58, %c0_59, %c0_60] : memref<9x1x128xf32, #tpu.memory_space<vmem>>, vector<1x1x128xf32>
    %149 = vector.shape_cast %148 : vector<1x1x128xf32> to vector<1x128xf32>
    %150 = vector.broadcast %149 : vector<1x128xf32> to vector<8x128xf32>
    %151 = arith.mulf %147, %150 : vector<8x128xf32>
    %c1_i32 = arith.constant 1 : i32
    %152 = tpu.dynamic_rotate %136 by %c1_i32 dim 1 : vector<8x128xf32>, i32 -> vector<8x128xf32>
    %c3_61 = arith.constant 3 : index
    %c0_62 = arith.constant 0 : index
    %c0_63 = arith.constant 0 : index
    %153 = vector.load %arg10[%c3_61, %c0_62, %c0_63] : memref<9x1x128xf32, #tpu.memory_space<vmem>>, vector<1x1x128xf32>
    %154 = vector.shape_cast %153 : vector<1x1x128xf32> to vector<1x128xf32>
    %155 = vector.broadcast %154 : vector<1x128xf32> to vector<8x128xf32>
    %156 = arith.mulf %152, %155 : vector<8x128xf32>
    %c127_i32 = arith.constant 127 : i32
    %157 = tpu.dynamic_rotate %136 by %c127_i32 dim 1 : vector<8x128xf32>, i32 -> vector<8x128xf32>
    %c5_64 = arith.constant 5 : index
    %c0_65 = arith.constant 0 : index
    %c0_66 = arith.constant 0 : index
    %158 = vector.load %arg10[%c5_64, %c0_65, %c0_66] : memref<9x1x128xf32, #tpu.memory_space<vmem>>, vector<1x1x128xf32>
    %159 = vector.shape_cast %158 : vector<1x1x128xf32> to vector<1x128xf32>
    %160 = vector.broadcast %159 : vector<1x128xf32> to vector<8x128xf32>
    %161 = arith.mulf %157, %160 : vector<8x128xf32>
    %c121_i32 = arith.constant 121 : i32
    %162 = tpu.dynamic_rotate %136 by %c121_i32 dim 1 : vector<8x128xf32>, i32 -> vector<8x128xf32>
    %c6_67 = arith.constant 6 : index
    %c0_68 = arith.constant 0 : index
    %c0_69 = arith.constant 0 : index
    %163 = vector.load %arg10[%c6_67, %c0_68, %c0_69] : memref<9x1x128xf32, #tpu.memory_space<vmem>>, vector<1x1x128xf32>
    %164 = vector.shape_cast %163 : vector<1x1x128xf32> to vector<1x128xf32>
    %165 = vector.broadcast %164 : vector<1x128xf32> to vector<8x128xf32>
    %166 = arith.mulf %162, %165 : vector<8x128xf32>
    %c120_i32 = arith.constant 120 : i32
    %167 = tpu.dynamic_rotate %136 by %c120_i32 dim 1 : vector<8x128xf32>, i32 -> vector<8x128xf32>
    %c7_70 = arith.constant 7 : index
    %c0_71 = arith.constant 0 : index
    %c0_72 = arith.constant 0 : index
    %168 = vector.load %arg10[%c7_70, %c0_71, %c0_72] : memref<9x1x128xf32, #tpu.memory_space<vmem>>, vector<1x1x128xf32>
    %169 = vector.shape_cast %168 : vector<1x1x128xf32> to vector<1x128xf32>
    %170 = vector.broadcast %169 : vector<1x128xf32> to vector<8x128xf32>
    %171 = arith.mulf %167, %170 : vector<8x128xf32>
    %c119_i32 = arith.constant 119 : i32
    %172 = tpu.dynamic_rotate %136 by %c119_i32 dim 1 : vector<8x128xf32>, i32 -> vector<8x128xf32>
    %c8_73 = arith.constant 8 : index
    %c0_74 = arith.constant 0 : index
    %c0_75 = arith.constant 0 : index
    %173 = vector.load %arg10[%c8_73, %c0_74, %c0_75] : memref<9x1x128xf32, #tpu.memory_space<vmem>>, vector<1x1x128xf32>
    %174 = vector.shape_cast %173 : vector<1x1x128xf32> to vector<1x128xf32>
    %175 = vector.broadcast %174 : vector<1x128xf32> to vector<8x128xf32>
    %176 = arith.mulf %172, %175 : vector<8x128xf32>
    %177 = tpu.concatenate %141, %146, %151, %156, %136, %161, %166, %171, %176 in 0 : vector<8x128xf32>, vector<8x128xf32>, vector<8x128xf32>, vector<8x128xf32>, vector<8x128xf32>, vector<8x128xf32>, vector<8x128xf32>, vector<8x128xf32>, vector<8x128xf32> -> vector<72x128xf32>
    %c0_76 = arith.constant 0 : index
    %c0_77 = arith.constant 0 : index
    %178 = vector.load %arg9[%c0_76, %c0_77] : memref<8x72xf32, #tpu.memory_space<vmem>>, vector<8x72xf32>
    %cst_78 = arith.constant dense<0.000000e+00> : vector<8x128xf32>
    %179 = tpu.matmul %178, %177, %cst_78 {dimension_numbers = #tpu.dot_dimension_numbers<[1], [0], [0], [1], [0, 0, 1, 1], [], []>} : vector<8x72xf32>, vector<72x128xf32>, vector<8x128xf32> -> vector<8x128xf32>
    %c0_79 = arith.constant 0 : index
    %c0_80 = arith.constant 0 : index
    %180 = vector.load %arg11[%c0_79, %c0_80] : memref<8x1xf32, #tpu.memory_space<vmem>>, vector<8x1xf32>
    %c0_81 = arith.constant 0 : index
    %c0_82 = arith.constant 0 : index
    %181 = vector.load %arg12[%c0_81, %c0_82] : memref<8x1xf32, #tpu.memory_space<vmem>>, vector<8x1xf32>
    %cst_83 = arith.constant dense<0.000000e+00> : vector<8xf32>
    %182 = vector.multi_reduction <add>, %179, %cst_83 [1] : vector<8x128xf32> to vector<8xf32>
    %183 = vector.shape_cast %182 : vector<8xf32> to vector<8x1xf32>
    %cst_84 = arith.constant 7.812500e-03 : f32
    %184 = vector.broadcast %cst_84 : f32 to vector<8x1xf32>
    %185 = arith.mulf %183, %184 : vector<8x1xf32>
    %186 = arith.mulf %179, %179 : vector<8x128xf32>
    %cst_85 = arith.constant dense<0.000000e+00> : vector<8xf32>
    %187 = vector.multi_reduction <add>, %186, %cst_85 [1] : vector<8x128xf32> to vector<8xf32>
    %188 = vector.shape_cast %187 : vector<8xf32> to vector<8x1xf32>
    %cst_86 = arith.constant 7.812500e-03 : f32
    %189 = vector.broadcast %cst_86 : f32 to vector<8x1xf32>
    %190 = arith.mulf %188, %189 : vector<8x1xf32>
    %191 = arith.mulf %185, %185 : vector<8x1xf32>
    %192 = arith.subf %190, %191 : vector<8x1xf32>
    %193 = vector.broadcast %185 : vector<8x1xf32> to vector<8x128xf32>
    %194 = arith.subf %179, %193 : vector<8x128xf32>
    %cst_87 = arith.constant 9.99999974E-6 : f32
    %195 = vector.broadcast %cst_87 : f32 to vector<8x1xf32>
    %196 = arith.addf %192, %195 : vector<8x1xf32>
    %197 = math.rsqrt %196 : vector<8x1xf32>
    %198 = vector.broadcast %197 : vector<8x1xf32> to vector<8x128xf32>
    %199 = arith.mulf %194, %198 : vector<8x128xf32>
    %200 = vector.broadcast %180 : vector<8x1xf32> to vector<8x128xf32>
    %201 = arith.mulf %199, %200 : vector<8x128xf32>
    %202 = vector.broadcast %181 : vector<8x1xf32> to vector<8x128xf32>
    %203 = arith.addf %201, %202 : vector<8x128xf32>
    %cst_88 = arith.constant 0.000000e+00 : f32
    %204 = vector.broadcast %cst_88 : f32 to vector<8x128xf32>
    %205 = arith.cmpf ogt, %203, %204 : vector<8x128xf32>
    %206 = math.exp %203 : vector<8x128xf32>
    %cst_89 = arith.constant 1.000000e+00 : f32
    %207 = vector.broadcast %cst_89 : f32 to vector<8x128xf32>
    %208 = arith.subf %206, %207 : vector<8x128xf32>
    %cst_90 = arith.constant 1.67326319 : f32
    %209 = vector.broadcast %cst_90 : f32 to vector<8x128xf32>
    %210 = arith.mulf %209, %208 : vector<8x128xf32>
    %211 = arith.select %205, %203, %210 : vector<8x128xi1>, vector<8x128xf32>
    %cst_91 = arith.constant 1.05070102 : f32
    %212 = vector.broadcast %cst_91 : f32 to vector<8x128xf32>
    %213 = arith.mulf %212, %211 : vector<8x128xf32>
    %c9_i32_92 = arith.constant 9 : i32
    %214 = tpu.dynamic_rotate %213 by %c9_i32_92 dim 1 : vector<8x128xf32>, i32 -> vector<8x128xf32>
    %c0_93 = arith.constant 0 : index
    %c0_94 = arith.constant 0 : index
    %c0_95 = arith.constant 0 : index
    %215 = vector.load %arg10[%c0_93, %c0_94, %c0_95] : memref<9x1x128xf32, #tpu.memory_space<vmem>>, vector<1x1x128xf32>
    %216 = vector.shape_cast %215 : vector<1x1x128xf32> to vector<1x128xf32>
    %217 = vector.broadcast %216 : vector<1x128xf32> to vector<8x128xf32>
    %218 = arith.mulf %214, %217 : vector<8x128xf32>
    %c8_i32_96 = arith.constant 8 : i32
    %219 = tpu.dynamic_rotate %213 by %c8_i32_96 dim 1 : vector<8x128xf32>, i32 -> vector<8x128xf32>
    %c1_97 = arith.constant 1 : index
    %c0_98 = arith.constant 0 : index
    %c0_99 = arith.constant 0 : index
    %220 = vector.load %arg10[%c1_97, %c0_98, %c0_99] : memref<9x1x128xf32, #tpu.memory_space<vmem>>, vector<1x1x128xf32>
    %221 = vector.shape_cast %220 : vector<1x1x128xf32> to vector<1x128xf32>
    %222 = vector.broadcast %221 : vector<1x128xf32> to vector<8x128xf32>
    %223 = arith.mulf %219, %222 : vector<8x128xf32>
    %c7_i32_100 = arith.constant 7 : i32
    %224 = tpu.dynamic_rotate %213 by %c7_i32_100 dim 1 : vector<8x128xf32>, i32 -> vector<8x128xf32>
    %c2_101 = arith.constant 2 : index
    %c0_102 = arith.constant 0 : index
    %c0_103 = arith.constant 0 : index
    %225 = vector.load %arg10[%c2_101, %c0_102, %c0_103] : memref<9x1x128xf32, #tpu.memory_space<vmem>>, vector<1x1x128xf32>
    %226 = vector.shape_cast %225 : vector<1x1x128xf32> to vector<1x128xf32>
    %227 = vector.broadcast %226 : vector<1x128xf32> to vector<8x128xf32>
    %228 = arith.mulf %224, %227 : vector<8x128xf32>
    %c1_i32_104 = arith.constant 1 : i32
    %229 = tpu.dynamic_rotate %213 by %c1_i32_104 dim 1 : vector<8x128xf32>, i32 -> vector<8x128xf32>
    %c3_105 = arith.constant 3 : index
    %c0_106 = arith.constant 0 : index
    %c0_107 = arith.constant 0 : index
    %230 = vector.load %arg10[%c3_105, %c0_106, %c0_107] : memref<9x1x128xf32, #tpu.memory_space<vmem>>, vector<1x1x128xf32>
    %231 = vector.shape_cast %230 : vector<1x1x128xf32> to vector<1x128xf32>
    %232 = vector.broadcast %231 : vector<1x128xf32> to vector<8x128xf32>
    %233 = arith.mulf %229, %232 : vector<8x128xf32>
    %c127_i32_108 = arith.constant 127 : i32
    %234 = tpu.dynamic_rotate %213 by %c127_i32_108 dim 1 : vector<8x128xf32>, i32 -> vector<8x128xf32>
    %c5_109 = arith.constant 5 : index
    %c0_110 = arith.constant 0 : index
    %c0_111 = arith.constant 0 : index
    %235 = vector.load %arg10[%c5_109, %c0_110, %c0_111] : memref<9x1x128xf32, #tpu.memory_space<vmem>>, vector<1x1x128xf32>
    %236 = vector.shape_cast %235 : vector<1x1x128xf32> to vector<1x128xf32>
    %237 = vector.broadcast %236 : vector<1x128xf32> to vector<8x128xf32>
    %238 = arith.mulf %234, %237 : vector<8x128xf32>
    %c121_i32_112 = arith.constant 121 : i32
    %239 = tpu.dynamic_rotate %213 by %c121_i32_112 dim 1 : vector<8x128xf32>, i32 -> vector<8x128xf32>
    %c6_113 = arith.constant 6 : index
    %c0_114 = arith.constant 0 : index
    %c0_115 = arith.constant 0 : index
    %240 = vector.load %arg10[%c6_113, %c0_114, %c0_115] : memref<9x1x128xf32, #tpu.memory_space<vmem>>, vector<1x1x128xf32>
    %241 = vector.shape_cast %240 : vector<1x1x128xf32> to vector<1x128xf32>
    %242 = vector.broadcast %241 : vector<1x128xf32> to vector<8x128xf32>
    %243 = arith.mulf %239, %242 : vector<8x128xf32>
    %c120_i32_116 = arith.constant 120 : i32
    %244 = tpu.dynamic_rotate %213 by %c120_i32_116 dim 1 : vector<8x128xf32>, i32 -> vector<8x128xf32>
    %c7_117 = arith.constant 7 : index
    %c0_118 = arith.constant 0 : index
    %c0_119 = arith.constant 0 : index
    %245 = vector.load %arg10[%c7_117, %c0_118, %c0_119] : memref<9x1x128xf32, #tpu.memory_space<vmem>>, vector<1x1x128xf32>
    %246 = vector.shape_cast %245 : vector<1x1x128xf32> to vector<1x128xf32>
    %247 = vector.broadcast %246 : vector<1x128xf32> to vector<8x128xf32>
    %248 = arith.mulf %244, %247 : vector<8x128xf32>
    %c119_i32_120 = arith.constant 119 : i32
    %249 = tpu.dynamic_rotate %213 by %c119_i32_120 dim 1 : vector<8x128xf32>, i32 -> vector<8x128xf32>
    %c8_121 = arith.constant 8 : index
    %c0_122 = arith.constant 0 : index
    %c0_123 = arith.constant 0 : index
    %250 = vector.load %arg10[%c8_121, %c0_122, %c0_123] : memref<9x1x128xf32, #tpu.memory_space<vmem>>, vector<1x1x128xf32>
    %251 = vector.shape_cast %250 : vector<1x1x128xf32> to vector<1x128xf32>
    %252 = vector.broadcast %251 : vector<1x128xf32> to vector<8x128xf32>
    %253 = arith.mulf %249, %252 : vector<8x128xf32>
    %254 = tpu.concatenate %218, %223, %228, %233, %213, %238, %243, %248, %253 in 0 : vector<8x128xf32>, vector<8x128xf32>, vector<8x128xf32>, vector<8x128xf32>, vector<8x128xf32>, vector<8x128xf32>, vector<8x128xf32>, vector<8x128xf32>, vector<8x128xf32> -> vector<72x128xf32>
    %c0_124 = arith.constant 0 : index
    %c0_125 = arith.constant 0 : index
    %255 = vector.load %arg13[%c0_124, %c0_125] : memref<32x72xf32, #tpu.memory_space<vmem>>, vector<32x72xf32>
    %cst_126 = arith.constant dense<0.000000e+00> : vector<32x128xf32>
    %256 = tpu.matmul %255, %254, %cst_126 {dimension_numbers = #tpu.dot_dimension_numbers<[1], [0], [0], [1], [0, 0, 1, 1], [], []>} : vector<32x72xf32>, vector<72x128xf32>, vector<32x128xf32> -> vector<32x128xf32>
    %257 = vector.extract_strided_slice %256 {offsets = [0, 0], sizes = [8, 128], strides = [1, 1]} : vector<32x128xf32> to vector<8x128xf32>
    %c127_i32_127 = arith.constant 127 : i32
    %258 = tpu.dynamic_rotate %257 by %c127_i32_127 dim 1 : vector<8x128xf32>, i32 -> vector<8x128xf32>
    %c5_128 = arith.constant 5 : index
    %c0_129 = arith.constant 0 : index
    %c0_130 = arith.constant 0 : index
    %259 = vector.load %arg10[%c5_128, %c0_129, %c0_130] : memref<9x1x128xf32, #tpu.memory_space<vmem>>, vector<1x1x128xf32>
    %260 = vector.shape_cast %259 : vector<1x1x128xf32> to vector<1x128xf32>
    %261 = vector.broadcast %260 : vector<1x128xf32> to vector<8x128xf32>
    %262 = arith.mulf %258, %261 : vector<8x128xf32>
    %c120_i32_131 = arith.constant 120 : i32
    %263 = tpu.dynamic_rotate %257 by %c120_i32_131 dim 1 : vector<8x128xf32>, i32 -> vector<8x128xf32>
    %c7_132 = arith.constant 7 : index
    %c0_133 = arith.constant 0 : index
    %c0_134 = arith.constant 0 : index
    %264 = vector.load %arg10[%c7_132, %c0_133, %c0_134] : memref<9x1x128xf32, #tpu.memory_space<vmem>>, vector<1x1x128xf32>
    %265 = vector.shape_cast %264 : vector<1x1x128xf32> to vector<1x128xf32>
    %266 = vector.broadcast %265 : vector<1x128xf32> to vector<8x128xf32>
    %267 = arith.mulf %263, %266 : vector<8x128xf32>
    %c119_i32_135 = arith.constant 119 : i32
    %268 = tpu.dynamic_rotate %257 by %c119_i32_135 dim 1 : vector<8x128xf32>, i32 -> vector<8x128xf32>
    %c8_136 = arith.constant 8 : index
    %c0_137 = arith.constant 0 : index
    %c0_138 = arith.constant 0 : index
    %269 = vector.load %arg10[%c8_136, %c0_137, %c0_138] : memref<9x1x128xf32, #tpu.memory_space<vmem>>, vector<1x1x128xf32>
    %270 = vector.shape_cast %269 : vector<1x1x128xf32> to vector<1x128xf32>
    %271 = vector.broadcast %270 : vector<1x128xf32> to vector<8x128xf32>
    %272 = arith.mulf %268, %271 : vector<8x128xf32>
    %273 = vector.extract_strided_slice %256 {offsets = [8, 0], sizes = [8, 128], strides = [1, 1]} : vector<32x128xf32> to vector<8x128xf32>
    %c1_i32_139 = arith.constant 1 : i32
    %274 = tpu.dynamic_rotate %273 by %c1_i32_139 dim 1 : vector<8x128xf32>, i32 -> vector<8x128xf32>
    %c3_140 = arith.constant 3 : index
    %c0_141 = arith.constant 0 : index
    %c0_142 = arith.constant 0 : index
    %275 = vector.load %arg10[%c3_140, %c0_141, %c0_142] : memref<9x1x128xf32, #tpu.memory_space<vmem>>, vector<1x1x128xf32>
    %276 = vector.shape_cast %275 : vector<1x1x128xf32> to vector<1x128xf32>
    %277 = vector.broadcast %276 : vector<1x128xf32> to vector<8x128xf32>
    %278 = arith.mulf %274, %277 : vector<8x128xf32>
    %c121_i32_143 = arith.constant 121 : i32
    %279 = tpu.dynamic_rotate %273 by %c121_i32_143 dim 1 : vector<8x128xf32>, i32 -> vector<8x128xf32>
    %c6_144 = arith.constant 6 : index
    %c0_145 = arith.constant 0 : index
    %c0_146 = arith.constant 0 : index
    %280 = vector.load %arg10[%c6_144, %c0_145, %c0_146] : memref<9x1x128xf32, #tpu.memory_space<vmem>>, vector<1x1x128xf32>
    %281 = vector.shape_cast %280 : vector<1x1x128xf32> to vector<1x128xf32>
    %282 = vector.broadcast %281 : vector<1x128xf32> to vector<8x128xf32>
    %283 = arith.mulf %279, %282 : vector<8x128xf32>
    %c120_i32_147 = arith.constant 120 : i32
    %284 = tpu.dynamic_rotate %273 by %c120_i32_147 dim 1 : vector<8x128xf32>, i32 -> vector<8x128xf32>
    %c7_148 = arith.constant 7 : index
    %c0_149 = arith.constant 0 : index
    %c0_150 = arith.constant 0 : index
    %285 = vector.load %arg10[%c7_148, %c0_149, %c0_150] : memref<9x1x128xf32, #tpu.memory_space<vmem>>, vector<1x1x128xf32>
    %286 = vector.shape_cast %285 : vector<1x1x128xf32> to vector<1x128xf32>
    %287 = vector.broadcast %286 : vector<1x128xf32> to vector<8x128xf32>
    %288 = arith.mulf %284, %287 : vector<8x128xf32>
    %289 = vector.extract_strided_slice %256 {offsets = [16, 0], sizes = [8, 128], strides = [1, 1]} : vector<32x128xf32> to vector<8x128xf32>
    %c8_i32_151 = arith.constant 8 : i32
    %290 = tpu.dynamic_rotate %289 by %c8_i32_151 dim 1 : vector<8x128xf32>, i32 -> vector<8x128xf32>
    %c1_152 = arith.constant 1 : index
    %c0_153 = arith.constant 0 : index
    %c0_154 = arith.constant 0 : index
    %291 = vector.load %arg10[%c1_152, %c0_153, %c0_154] : memref<9x1x128xf32, #tpu.memory_space<vmem>>, vector<1x1x128xf32>
    %292 = vector.shape_cast %291 : vector<1x1x128xf32> to vector<1x128xf32>
    %293 = vector.broadcast %292 : vector<1x128xf32> to vector<8x128xf32>
    %294 = arith.mulf %290, %293 : vector<8x128xf32>
    %c7_i32_155 = arith.constant 7 : i32
    %295 = tpu.dynamic_rotate %289 by %c7_i32_155 dim 1 : vector<8x128xf32>, i32 -> vector<8x128xf32>
    %c2_156 = arith.constant 2 : index
    %c0_157 = arith.constant 0 : index
    %c0_158 = arith.constant 0 : index
    %296 = vector.load %arg10[%c2_156, %c0_157, %c0_158] : memref<9x1x128xf32, #tpu.memory_space<vmem>>, vector<1x1x128xf32>
    %297 = vector.shape_cast %296 : vector<1x1x128xf32> to vector<1x128xf32>
    %298 = vector.broadcast %297 : vector<1x128xf32> to vector<8x128xf32>
    %299 = arith.mulf %295, %298 : vector<8x128xf32>
    %c127_i32_159 = arith.constant 127 : i32
    %300 = tpu.dynamic_rotate %289 by %c127_i32_159 dim 1 : vector<8x128xf32>, i32 -> vector<8x128xf32>
    %c5_160 = arith.constant 5 : index
    %c0_161 = arith.constant 0 : index
    %c0_162 = arith.constant 0 : index
    %301 = vector.load %arg10[%c5_160, %c0_161, %c0_162] : memref<9x1x128xf32, #tpu.memory_space<vmem>>, vector<1x1x128xf32>
    %302 = vector.shape_cast %301 : vector<1x1x128xf32> to vector<1x128xf32>
    %303 = vector.broadcast %302 : vector<1x128xf32> to vector<8x128xf32>
    %304 = arith.mulf %300, %303 : vector<8x128xf32>
    %305 = vector.extract_strided_slice %256 {offsets = [24, 0], sizes = [8, 128], strides = [1, 1]} : vector<32x128xf32> to vector<8x128xf32>
    %c9_i32_163 = arith.constant 9 : i32
    %306 = tpu.dynamic_rotate %305 by %c9_i32_163 dim 1 : vector<8x128xf32>, i32 -> vector<8x128xf32>
    %c0_164 = arith.constant 0 : index
    %c0_165 = arith.constant 0 : index
    %c0_166 = arith.constant 0 : index
    %307 = vector.load %arg10[%c0_164, %c0_165, %c0_166] : memref<9x1x128xf32, #tpu.memory_space<vmem>>, vector<1x1x128xf32>
    %308 = vector.shape_cast %307 : vector<1x1x128xf32> to vector<1x128xf32>
    %309 = vector.broadcast %308 : vector<1x128xf32> to vector<8x128xf32>
    %310 = arith.mulf %306, %309 : vector<8x128xf32>
    %c8_i32_167 = arith.constant 8 : i32
    %311 = tpu.dynamic_rotate %305 by %c8_i32_167 dim 1 : vector<8x128xf32>, i32 -> vector<8x128xf32>
    %c1_168 = arith.constant 1 : index
    %c0_169 = arith.constant 0 : index
    %c0_170 = arith.constant 0 : index
    %312 = vector.load %arg10[%c1_168, %c0_169, %c0_170] : memref<9x1x128xf32, #tpu.memory_space<vmem>>, vector<1x1x128xf32>
    %313 = vector.shape_cast %312 : vector<1x1x128xf32> to vector<1x128xf32>
    %314 = vector.broadcast %313 : vector<1x128xf32> to vector<8x128xf32>
    %315 = arith.mulf %311, %314 : vector<8x128xf32>
    %c1_i32_171 = arith.constant 1 : i32
    %316 = tpu.dynamic_rotate %305 by %c1_i32_171 dim 1 : vector<8x128xf32>, i32 -> vector<8x128xf32>
    %c3_172 = arith.constant 3 : index
    %c0_173 = arith.constant 0 : index
    %c0_174 = arith.constant 0 : index
    %317 = vector.load %arg10[%c3_172, %c0_173, %c0_174] : memref<9x1x128xf32, #tpu.memory_space<vmem>>, vector<1x1x128xf32>
    %318 = vector.shape_cast %317 : vector<1x1x128xf32> to vector<1x128xf32>
    %319 = vector.broadcast %318 : vector<1x128xf32> to vector<8x128xf32>
    %320 = arith.mulf %316, %319 : vector<8x128xf32>
    %321 = tpu.concatenate %257, %262, %267, %272, %278, %273, %283, %288, %294, %299, %289, %304, %310, %315, %320, %305 in 0 : vector<8x128xf32>, vector<8x128xf32>, vector<8x128xf32>, vector<8x128xf32>, vector<8x128xf32>, vector<8x128xf32>, vector<8x128xf32>, vector<8x128xf32>, vector<8x128xf32>, vector<8x128xf32>, vector<8x128xf32>, vector<8x128xf32>, vector<8x128xf32>, vector<8x128xf32>, vector<8x128xf32>, vector<8x128xf32> -> vector<128x128xf32>
    %c0_175 = arith.constant 0 : index
    %c0_176 = arith.constant 0 : index
    %322 = vector.load %arg14[%c0_175, %c0_176] : memref<12x128xf32, #tpu.memory_space<vmem>>, vector<12x128xf32>
    %cst_177 = arith.constant dense<0.000000e+00> : vector<12x128xf32>
    %323 = tpu.matmul %322, %321, %cst_177 {dimension_numbers = #tpu.dot_dimension_numbers<[1], [0], [0], [1], [0, 0, 1, 1], [], []>} : vector<12x128xf32>, vector<128x128xf32>, vector<12x128xf32> -> vector<12x128xf32>
    %324 = math.tanh %323 : vector<12x128xf32>
    %c0_178 = arith.constant 0 : index
    %c0_179 = arith.constant 0 : index
    %325 = vector.load %arg15[%c0_178, %c0_179] : memref<12x128xf32, #tpu.memory_space<vmem>>, vector<12x128xf32>
    tpu.vector_store %arg15[%c0_178, %c0_179], %324 {strides = array<i32>} : memref<12x128xf32, #tpu.memory_space<vmem>>, vector<12x128xf32>,
    return
  }
}

</mosaic_0001>

<bundles_post_ra>
// kernel: generator_forward.1
= control target key start
LH: loop header
LB: loop body
LE: loop exit
PB: predicated region body
PF: predicated region fallthrough
CT: control target
= control target key end

     0   :  { %v1421_v2 = vmov 0   ;;  %vm147_vm0 = vcmask 261120   ;;  %v1422_v62 = vmov 0.0   ;;  %s1425_s30 = smov 31   ;;  %s1426_s16 = smov 28   ;;  %vm425_vm3 = vcmask 130048   ;;  %s1972_s0 = inlined_call_operand.vmem [shape: f32[128,32], index: 0, kind: input, shape index: {}]   ;;  %s1973_s1 = inlined_call_operand.vmem [shape: f32[16,128], index: 1, kind: input, shape index: {}]   ;;  %s1974_s2 = inlined_call_operand.vmem [shape: f32[16,1], index: 2, kind: input, shape index: {}]   ;;  %s1975_s3 = inlined_call_operand.vmem [shape: f32[16,1], index: 3, kind: input, shape index: {}]   ;;  %s1976_s4 = inlined_call_operand.vmem [shape: f32[32,144], index: 4, kind: input, shape index: {}]   ;;  %s1977_s5 = inlined_call_operand.vmem [shape: f32[9,1,32], index: 5, kind: input, shape index: {}]   ;;  %s1978_s7 = inlined_call_operand.vmem [shape: f32[8,1], index: 7, kind: input, shape index: {}]   ;;  %s1979_s6 = inlined_call_operand.vmem [shape: f32[8,1], index: 6, kind: input, shape index: {}]   ;;  %s1980_s8 = inlined_call_operand.vmem [shape: f32[128,128], index: 8, kind: input, shape index: {}]   ;;  %s1981_s10 = inlined_call_operand.vmem [shape: f32[9,1,128], index: 10, kind: input, shape index: {}]   ;;  %s1982_s9 = inlined_call_operand.vmem [shape: f32[8,72], index: 9, kind: input, shape index: {}]   ;;  %s1983_s12 = inlined_call_operand.vmem [shape: f32[8,1], index: 12, kind: input, shape index: {}]   ;;  %s1984_s11 = inlined_call_operand.vmem [shape: f32[8,1], index: 11, kind: input, shape index: {}]   ;;  %s1985_s13 = inlined_call_operand.vmem [shape: f32[32,72], index: 13, kind: input, shape index: {}]   ;;  %s1986_s14 = inlined_call_operand.vmem [shape: f32[12,128], index: 14, kind: input, shape index: {}]   ;;  %s1987_s15 = inlined_call_operand.vmem [shape: f32[12,128], index: 15, kind: output, shape index: {}]  }
   0x1   :  { %v67_v0 = vld [vmem:[%s1972_s0 + $0x78] sm:$0xff]  ;;  %v66_v1 = vld [vmem:[%s1972_s0 + $0x70] sm:$0xff]  ;;  %1400 = vset.pattern.permute.xlu1 %v1421_v2  ;;  %1399 = vset.pattern.permute.xlu0 %v1421_v2  ;;  %v65_v3 = vld [vmem:[%s1972_s0 + $0x68] sm:$0xff]  ;;  %s1427_s17 = smov 1   ;;  %s1428_s18 = smov 125   ;;  %vm379_vm4 = vcmask 228352  }
   0x2   :  { %1221 = vmatprep.subr.mxu0 %v67_v0  ;;  %v64_v4 = vld [vmem:[%s1972_s0 + $0x60] sm:$0xff]  ;;  %v63_v6 = vld [vmem:[%s1972_s0 + $0x58] sm:$0xff]  ;;  %v62_v8 = vld [vmem:[%s1972_s0 + $0x50] sm:$0xff]  ;;  %438 = vmatprep.subr.mxu1 %v1422_v62  ;;  %s1429_s19 = smov 3   ;;  %s1430_s20 = smov 127   ;;  %vm354_vm5 = vcmask 236544  }
   0x3   :  { %1222 = vmatpush3.msra.mxu0 %v67_v0  ;;  %v50_v5 = vld [vmem:[%s1973_s1] sm:$0xff]  ;;  %v146_v9 = vld [vmem:[%s1975_s3 + $0x8] sm:$0xff]  ;;  %v59_v12 = vld [vmem:[%s1972_s0 + $0x38] sm:$0xff]  ;;  %s1431_s21 = smov 4   ;;  %s1432_s22 = smov 97   ;;  %vm329_vm6 = vcmask 252928  }
   0x4   :  { %1223 = vmatprep.subr.mxu0 %v66_v1  ;;  %1253 = vmatprep.mubr.f32.mxu0 %v50_v5  ;;  %v143_v7 = vld [vmem:[%s1974_s2] sm:$0xff]  ;;  %v61_v10 = vld [vmem:[%s1972_s0 + $0x48] sm:$0xff]  ;;  %v58_v13 = vld [vmem:[%s1972_s0 + $0x30] sm:$0xff]  ;;  %s1433_s23 = smov 5   ;;  %s1434_s24 = smov 99   ;;  %vm304_vm7 = vcmask 7168  }
   0x5   :  { %1224 = vmatpush3.msra.mxu0 %v66_v1  ;;  %180 = vperm.xlu1 %1400, %v143_v7   ;;  %v60_v11 = vld [vmem:[%s1972_s0 + $0x40] sm:$0xff]  ;;  %v57_v14 = vld [vmem:[%s1972_s0 + $0x28] sm:$0xff]  ;;  %v55_v16 = vld [vmem:[%s1972_s0 + $0x18] sm:$0xff]  ;;  %s1435_s25 = smov 100   ;;  %s1436_s26 = smov 101   ;;  %vm279_vm8 = vcmask 23552  }
   0x6   :  { %1225 = vmatprep.subr.mxu0 %v65_v3  ;;  %v56_v15 = vld [vmem:[%s1972_s0 + $0x20] sm:$0xff]  ;;  %v54_v17 = vld [vmem:[%s1972_s0 + $0x10] sm:$0xff]  ;;  %v53_v18 = vld [vmem:[%s1972_s0 + $0x8] sm:$0xff]  ;;  %s1437_s27 = smov 27   ;;  %vm254_vm9 = vcmask 31744   ;;  %vm230_vm10 = vcmask 39936  }
   0x7   :  { %1226 = vmatpush3.msra.mxu0 %v65_v3  ;;  %v52_v19 = vld [vmem:[%s1972_s0] sm:$0xff]  ;;  %v51_v20 = vld [vmem:[%s1973_s1 + $0x8] sm:$0xff]  ;;  %s1438_s0 = smov 123   ;;  %vm404_vm11 = vcmask 220160   ;;  %vm536_vm12 = vcmask 523264   ;;  %vm538_vm13 = vcmask 785408  }
   0x8   :  { %1227 = vmatprep.subr.mxu0 %v64_v4  ;;  %v145_v29 = vld [vmem:[%s1975_s3] sm:$0xff]  ;;  %v144_v30 = vld [vmem:[%s1974_s2 + $0x8] sm:$0xff]  ;;  %s1423_s2 = smov 29   ;;  %s1424_s3 = smov 124   ;;  %vm1442_vm14 = vmmov 0  }
   0x9   :  { %1228 = vmatpush3.msra.mxu0 %v64_v4  ;;  %197 = vperm.xlu1 %1400, %v146_v9  }
   0xa   :  { %1229 = vmatprep.subr.mxu0 %v63_v6 }
   0xb   :  { %1230 = vmatpush3.msra.mxu0 %v63_v6 }
   0xc   :  { %1231 = vmatprep.subr.mxu0 %v62_v8 }
   0xd   :  { %1232 = vmatpush3.msra.mxu0 %v62_v8  ;;  %v418_v8 = vld [vmem:[%s1976_s4 + $0x8] sm:$0xff] }
   0xe   :  { %1233 = vmatprep.subr.mxu0 %v61_v10  ;;  %1119 = vmatprep.mubr.msk.f32.mxu1 %vm425_vm3, %v418_v8 }
   0xf   :  { %1234 = vmatpush3.msra.mxu0 %v61_v10 }
  0x10   :  { %1235 = vmatprep.subr.mxu0 %v60_v11 }
  0x11   :  { %1236 = vmatpush3.msra.mxu0 %v60_v11  ;;  %v1116_v11 = vld [vmem:[%s1977_s5 + $0x7] ss:$0 sm:$0xff] }
  0x12   :  { %1237 = vmatprep.subr.mxu0 %v59_v12 }
  0x13   :  { %1238 = vmatpush3.msra.mxu0 %v59_v12 }
  0x14   :  { %1239 = vmatprep.subr.mxu0 %v58_v13 }
  0x15   :  { %1240 = vmatpush3.msra.mxu0 %v58_v13 }
  0x16   :  { %1241 = vmatprep.subr.mxu0 %v57_v14 }
  0x17   :  { %1242 = vmatpush3.msra.mxu0 %v57_v14 }
  0x18   :  { %1243 = vmatprep.subr.mxu0 %v56_v15 }
  0x19   :  { %1244 = vmatpush3.msra.mxu0 %v56_v15 }
  0x1a   :  { %1245 = vmatprep.subr.mxu0 %v55_v16 }
  0x1b   :  { %1246 = vmatpush3.msra.mxu0 %v55_v16 }
  0x1c   :  { %1247 = vmatprep.subr.mxu0 %v54_v17 }
  0x1d   :  { %1248 = vmatpush3.msra.mxu0 %v54_v17 }
  0x1e   :  { %1249 = vmatprep.subr.mxu0 %v53_v18 }
  0x1f   :  { %1250 = vmatpush3.msra.mxu0 %v53_v18 }
  0x20   :  { %1251 = vmatprep.subr.mxu0 %v52_v19 }
  0x21   :  { %1252 = vmatpush3.msra.mxu0 %v52_v19 }
  0x22   :  { %1254 = vmatmul.mubr.f32.vlgmr.msra.gmra.mxu0 %v51_v20  ;;  %1256 = vmatprep.subr.mxu0 %v1422_v62 }
  0x23   :  { %1288 = vmatprep.mubr.msk.f32.mxu0 %vm1442_vm14, %v1422_v62 }
  0x80   :  { %v181_v31 = vpop.permute.xlu1 %180 }
  0x84   :  { %v198_v32 = vpop.permute.xlu1 %197 }
  0xe2   :  { %v1255_v21 = vpop.f32.mrf.mxu0 }
  0xe3   :  { %v151_v22 = vsel %vm147_vm0, %v1255_v21, 0.0  ;;  %v157_v23 = vmul.f32 %v1255_v21, %v1255_v21 }
  0xe4   :  { %152 = vadd.xlane.f32.xlu0 %v151_v22  ;;  %v134_v24 = vpop.f32.mrf.mxu0 }
  0xe5   :  { %v161_v25 = vsel %vm147_vm0, %v157_v23, 0.0  ;;  %v156_v26 = vmul.f32 %v134_v24, %v134_v24  ;;  %v148_v27 = vsel %vm147_vm0, %v134_v24, 0.0 }
  0xe6   :  { %162 = vadd.xlane.f32.xlu1 %v161_v25 }
  0xe7   :  { %v158_v28 = vsel %vm147_vm0, %v156_v26, 0.0 }
  0xe8   :  { %149 = vadd.xlane.f32.xlu0 %v148_v27 }
  0xea   :  { %159 = vadd.xlane.f32.xlu1 %v158_v28 }
  0xfb   :  { %192 = vperm.xlu1 %1400, %v145_v29  }
  0xfe   :  { %185 = vperm.xlu0 %1399, %v144_v30   ;;  %v1114_v30 = vld [vmem:[%s1977_s5 + $0x6] ss:$0 sm:$0xff] }
 0x16d   :  { %v153_v33 = vpop.xlane.xlu0 %152 }
 0x16e   :  { %v155_v34 = vmul.f32 0.03125, %v153_v33 }
 0x16f   :  { %v163_v35 = vpop.xlane.xlu1 %162 }
 0x170   :  { %v167_v36 = vmul.f32 %v155_v34, %v155_v34  ;;  %v165_v37 = vmul.f32 0.03125, %v163_v35  ;;  %v171_v47 = vsub.f32 %v1255_v21, %v155_v34 }
 0x171   :  { %v150_v38 = vpop.xlane.xlu0 %149 }
 0x172   :  { %v169_v39 = vsub.f32 %v165_v37, %v167_v36  ;;  %v154_v40 = vmul.f32 0.03125, %v150_v38  ;;  %v1112_v37 = vld [vmem:[%s1977_s5 + $0x5] ss:$0 sm:$0xff] }
 0x173   :  { %v160_v41 = vpop.xlane.xlu1 %159 }
 0x174   :  { %v173_v42 = vadd.f32 1e-05, %v169_v39  ;;  %v166_v43 = vmul.f32 %v154_v40, %v154_v40  ;;  %v164_v44 = vmul.f32 0.03125, %v160_v41  ;;  %v170_v54 = vsub.f32 %v134_v24, %v154_v40 }
 0x176   :  { %1401 = vrsqrt.f32 %v173_v42  ;;  %v168_v45 = vsub.f32 %v164_v44, %v166_v43 }
 0x177   :  { %v193_v58 = vpop.permute.xlu1 %192 }
 0x178   :  { %v172_v46 = vadd.f32 1e-05, %v168_v45 }
 0x179   :  { %v186_v49 = vpop.permute.xlu0 %185 }
 0x17a   :  { %1403 = vrsqrt.f32 %v172_v46 }
 0x183   :  { %v1402_v48 = vpop.eup %1401 }
 0x184   :  { %v177_v50 = vmul.f32 %v1402_v48, %v171_v47  ;;  %v1110_v47 = vld [vmem:[%s1977_s5 + $0x3] ss:$0 sm:$0xff] }
 0x186   :  { %v189_v51 = vmul.f32 %v186_v49, %v177_v50 }
 0x187   :  { %v1404_v53 = vpop.eup %1403 }
 0x188   :  { %v201_v52 = vadd.f32 %v198_v32, %v189_v51  ;;  %v176_v56 = vmul.f32 %v1404_v53, %v170_v54 }
 0x18a   :  { %v206_v55 = vmul.f32 1.442695, %v201_v52  ;;  %v188_v57 = vmul.f32 %v181_v31, %v176_v56  ;;  %vm203_vm1 = vcmp.gt.f32.partialorder %v201_v52, 0.0 }
 0x18c   :  { %1405 = vpow2.f32 %v206_v55  ;;  %v200_v59 = vadd.f32 %v193_v58, %v188_v57 }
 0x18e   :  { %v204_v60 = vmul.f32 1.442695, %v200_v59  ;;  %vm202_vm2 = vcmp.gt.f32.partialorder %v200_v59, 0.0 }
 0x190   :  { %1407 = vpow2.f32 %v204_v60 }
 0x199   :  { %v1406_v61 = vpop.eup %1405 }
 0x19a   :  { %v1103_v63 = vadd.f32 -1.0, %v1406_v61 }
 0x19c   :  { %v211_v0 = vmul.f32 1.6732632, %v1103_v63 }
 0x19d   :  { %v1408_v3 = vpop.eup %1407 }
 0x19e   :  { %v213_v1 = vsel %vm203_vm1, %v201_v52, %v211_v0  ;;  %v1102_v4 = vadd.f32 -1.0, %v1408_v3  ;;  %v1108_v52 = vld [vmem:[%s1977_s5 + $0x2] ss:$0 sm:$0xff] }
 0x19f   :  { %v1601_v2 = vmul.f32 1.050701, %v213_v1 }
 0x1a0   :  { %v210_v5 = vmul.f32 1.6732632, %v1102_v4 }
 0x1a1   :  { %350 = vrot.lane.b32.xlu0 %v1601_v2, %s1423_s2  ;;  %369 = vrot.lane.b32.xlu1 %v1601_v2, %s1424_s3 }
 0x1a2   :  { %v212_v6 = vsel %vm202_vm2, %v200_v59, %v210_v5  ;;  %v1106_v59 = vld [vmem:[%s1977_s5 + $0x1] ss:$0 sm:$0xff] }
 0x1a3   :  { %v1620_v7 = vmul.f32 1.050701, %v212_v6 }
 0x1a5   :  { %325 = vrot.lane.b32.xlu0 %v1601_v2, %s1425_s30  ;;  %375 = vrot.lane.b32.xlu1 %v1601_v2, %s1426_s16 }
 0x1a9   :  { %300 = vrot.lane.b32.xlu0 %v1601_v2, %s1427_s17  ;;  %344 = vrot.lane.b32.xlu1 %v1601_v2, %s1428_s18 }
 0x1ad   :  { %275 = vrot.lane.b32.xlu0 %v1601_v2, %s1429_s19  ;;  %319 = vrot.lane.b32.xlu1 %v1601_v2, %s1430_s20 }
 0x1b1   :  { %250 = vrot.lane.b32.xlu0 %v1601_v2, %s1431_s21  ;;  %294 = vrot.lane.b32.xlu1 %v1601_v2, %s1432_s22 }
 0x1b5   :  { %226 = vrot.lane.b32.xlu0 %v1601_v2, %s1433_s23  ;;  %269 = vrot.lane.b32.xlu1 %v1601_v2, %s1434_s24 }
 0x1b9   :  { %348 = vrot.lane.b32.xlu0 %v1620_v7, %s1423_s2  ;;  %244 = vrot.lane.b32.xlu1 %v1601_v2, %s1435_s25 }
 0x1bd   :  { %323 = vrot.lane.b32.xlu0 %v1620_v7, %s1425_s30  ;;  %220 = vrot.lane.b32.xlu1 %v1601_v2, %s1436_s26 }
 0x1c1   :  { %400 = vrot.lane.b32.xlu0 %v1601_v2, %s1437_s27  ;;  %367 = vrot.lane.b32.xlu1 %v1620_v7, %s1424_s3 }
 0x1c5   :  { %298 = vrot.lane.b32.xlu0 %v1620_v7, %s1427_s17  ;;  %373 = vrot.lane.b32.xlu1 %v1620_v7, %s1426_s16 }
 0x1c9   :  { %273 = vrot.lane.b32.xlu0 %v1620_v7, %s1429_s19  ;;  %342 = vrot.lane.b32.xlu1 %v1620_v7, %s1428_s18 }
 0x1cd   :  { %248 = vrot.lane.b32.xlu0 %v1620_v7, %s1431_s21  ;;  %317 = vrot.lane.b32.xlu1 %v1620_v7, %s1430_s20 }
 0x1d1   :  { %224 = vrot.lane.b32.xlu0 %v1620_v7, %s1433_s23  ;;  %394 = vrot.lane.b32.xlu1 %v1601_v2, %s1438_s0  ;;  %s1444_s23 = smov 119  }
 0x1d5   :  { %398 = vrot.lane.b32.xlu0 %v1620_v7, %s1437_s27  ;;  %292 = vrot.lane.b32.xlu1 %v1620_v7, %s1432_s22  ;;  %s1440_s27 = smov 64  }
 0x1d9   :  { %267 = vrot.lane.b32.xlu1 %v1620_v7, %s1434_s24  ;;  %s1445_s24 = smov 121  }
 0x1dd   :  { %242 = vrot.lane.b32.xlu1 %v1620_v7, %s1435_s25  ;;  %s1446_s25 = smov 7  }
 0x1e1   :  { %218 = vrot.lane.b32.xlu1 %v1620_v7, %s1436_s26  ;;  %s1439_s26 = smov 32  }
 0x1e5   :  { %392 = vrot.lane.b32.xlu1 %v1620_v7, %s1438_s0  ;;  %s1441_s0 = smov 96  }
 0x213   :  { %v351_v9 = vpop.permute.xlu0 %350  ;;  %v370_v10 = vpop.permute.xlu1 %369 }
 0x217   :  { %v326_v12 = vpop.permute.xlu0 %325  ;;  %v376_v13 = vpop.permute.xlu1 %375 }
 0x218   :  { %v381_v14 = vsel %vm379_vm4, %v370_v10, %v376_v13 }
 0x219   :  { %v391_v15 = vmul.f32 %v1116_v11, %v381_v14 }
 0x21b   :  { %v301_v16 = vpop.permute.xlu0 %300  ;;  %439 = vmatpush1.msra.mxu1 %v391_v15  ;;  %v345_v17 = vpop.permute.xlu1 %344 }
 0x21c   :  { %440 = vmatprep.subr.mxu1 %v1422_v62  ;;  %v356_v31 = vsel %vm354_vm5, %v345_v17, %v351_v9  ;;  %v1118_v9 = vld [vmem:[%s1977_s5 + $0x8] ss:$0 sm:$0xff] }
 0x21d   :  { %v366_v35 = vmul.f32 %v1114_v30, %v356_v31 }
 0x21f   :  { %v276_v18 = vpop.permute.xlu0 %275  ;;  %v320_v19 = vpop.permute.xlu1 %319 }
 0x220   :  { %v331_v38 = vsel %vm329_vm6, %v320_v19, %v326_v12  ;;  %v420_v19 = vld [vmem:[%s1976_s4 + $0x18] sm:$0xff] }
 0x221   :  { %v341_v41 = vmul.f32 %v1112_v37, %v331_v38 }
 0x223   :  { %v1656_v20 = vpop.permute.xlu0 %250  ;;  %v295_v21 = vpop.permute.xlu1 %294 }
 0x224   :  { %v306_v48 = vsel %vm304_vm7, %v295_v21, %v301_v16  ;;  %v422_v21 = vld [vmem:[%s1976_s4 + $0x28] sm:$0xff] }
 0x225   :  { %v316_v50 = vmul.f32 %v1110_v47, %v306_v48  ;;  %v583_v48 = vld [vmem:[%s1980_s8 + $0x48] sm:$0xff] }
 0x227   :  { %v1658_v22 = vpop.permute.xlu0 %226  ;;  %v270_v23 = vpop.permute.xlu1 %269 }
 0x228   :  { %v281_v53 = vsel %vm279_vm8, %v270_v23, %v276_v18  ;;  %v417_v18 = vld [vmem:[%s1976_s4] sm:$0xff]  ;;  %v424_v23 = vld [vmem:[%s1976_s4 + $0x38] sm:$0xff] }
 0x229   :  { %v291_v56 = vmul.f32 %v1108_v52, %v281_v53  ;;  %v578_v53 = vld [vmem:[%s1980_s8 + $0x20] sm:$0xff] }
 0x22b   :  { %v245_v24 = vpop.permute.xlu1 %244  ;;  %v349_v25 = vpop.permute.xlu0 %348 }
 0x22c   :  { %v256_v60 = vsel %vm254_vm9, %v245_v24, %v1656_v20  ;;  %v419_v20 = vld [vmem:[%s1976_s4 + $0x10] sm:$0xff] }
 0x22d   :  { %v266_v0 = vmul.f32 %v1106_v59, %v256_v60  ;;  %v423_v24 = vld [vmem:[%s1976_s4 + $0x30] sm:$0xff] }
 0x22f   :  { %v1660_v26 = vpop.permute.xlu1 %220  ;;  %v324_v27 = vpop.permute.xlu0 %323 }
 0x230   :  { %v232_v3 = vsel %vm230_vm10, %v1660_v26, %v1658_v22  ;;  %v421_v22 = vld [vmem:[%s1976_s4 + $0x20] sm:$0xff] }
 0x233   :  { %v368_v28 = vpop.permute.xlu1 %367  ;;  %v1666_v33 = vpop.permute.xlu0 %400 }
 0x237   :  { %v374_v29 = vpop.permute.xlu1 %373  ;;  %v299_v42 = vpop.permute.xlu0 %298 }
 0x238   :  { %v380_v32 = vsel %vm379_vm4, %v368_v28, %v374_v29 }
 0x239   :  { %v390_v34 = vmul.f32 %v1116_v11, %v380_v32 }
 0x23b   :  { %441 = vmatpush1.msra.mxu1 %v390_v34  ;;  %v343_v36 = vpop.permute.xlu1 %342  ;;  %v274_v49 = vpop.permute.xlu0 %273 }
 0x23c   :  { %v355_v39 = vsel %vm354_vm5, %v343_v36, %v349_v25  ;;  %442 = vmatprep.subr.mxu1 %v1422_v62 }
 0x23d   :  { %v365_v40 = vmul.f32 %v1114_v30, %v355_v39  ;;  %443 = vmatpush1.msra.mxu1 %v366_v35 }
 0x23e   :  { %444 = vmatprep.subr.mxu1 %v1422_v62 }
 0x23f   :  { %445 = vmatpush1.msra.mxu1 %v365_v40  ;;  %v318_v43 = vpop.permute.xlu1 %317  ;;  %v249_v57 = vpop.permute.xlu0 %248  ;;  %v541_v40 = vld [vmem:[%s1978_s7] sm:$0xff] }
 0x240   :  { %v330_v44 = vsel %vm329_vm6, %v318_v43, %v324_v27  ;;  %446 = vmatprep.subr.mxu1 %v1422_v62  ;;  %v588_v43 = vld [vmem:[%s1980_s8 + $0x70] sm:$0xff] }
 0x241   :  { %v340_v45 = vmul.f32 %v1112_v37, %v330_v44  ;;  %447 = vmatpush1.msra.mxu1 %v341_v41  ;;  %v540_v41 = vld [vmem:[%s1979_s6] sm:$0xff]  ;;  %v587_v44 = vld [vmem:[%s1980_s8 + $0x68] sm:$0xff] }
 0x242   :  { %448 = vmatprep.subr.mxu1 %v1422_v62 }
 0x243   :  { %449 = vmatpush1.msra.mxu1 %v340_v45  ;;  %v395_v46 = vpop.permute.xlu1 %394  ;;  %v225_v5 = vpop.permute.xlu0 %224  ;;  %v586_v45 = vld [vmem:[%s1980_s8 + $0x60] sm:$0xff] }
 0x244   :  { %450 = vmatprep.subr.mxu1 %v1422_v62  ;;  %v406_v10 = vsel %vm404_vm11, %v395_v46, %v1666_v33  ;;  %v585_v46 = vld [vmem:[%s1980_s8 + $0x58] sm:$0xff] }
 0x245   :  { %451 = vmatpush1.msra.mxu1 %v1601_v2  ;;  %v1104_v2 = vld [vmem:[%s1977_s5] ss:$0 sm:$0xff]  ;;  %v416_v13 = vmul.f32 %v1118_v9, %v406_v10 }
 0x246   :  { %452 = vmatprep.subr.mxu1 %v1422_v62 }
 0x247   :  { %453 = vmatpush1.msra.mxu1 %v1620_v7  ;;  %v293_v51 = vpop.permute.xlu1 %292  ;;  %v241_v7 = vmul.f32 %v1104_v2, %v232_v3  ;;  %v399_v14 = vpop.permute.xlu0 %398 }
 0x248   :  { %v305_v54 = vsel %vm304_vm7, %v293_v51, %v299_v42  ;;  %454 = vmatprep.subr.mxu1 %v1422_v62  ;;  %v589_v42 = vld [vmem:[%s1980_s8 + $0x78] sm:$0xff]  ;;  %v580_v51 = vld [vmem:[%s1980_s8 + $0x30] sm:$0xff] }
 0x249   :  { %v315_v55 = vmul.f32 %v1110_v47, %v305_v54  ;;  %455 = vmatpush1.msra.mxu1 %v316_v50  ;;  %1257 = vmatpush3.msra.mxu0 %v589_v42  ;;  %v584_v47 = vld [vmem:[%s1980_s8 + $0x50] sm:$0xff]  ;;  %v581_v50 = vld [vmem:[%s1980_s8 + $0x38] sm:$0xff] }
 0x24a   :  { %456 = vmatprep.subr.mxu1 %v1422_v62  ;;  %1258 = vmatprep.subr.mxu0 %v1422_v62  ;;  %v577_v54 = vld [vmem:[%s1980_s8 + $0x18] sm:$0xff] }
 0x24b   :  { %457 = vmatpush1.msra.mxu1 %v315_v55  ;;  %v268_v58 = vpop.permute.xlu1 %267  ;;  %1259 = vmatpush3.msra.mxu0 %v588_v43  ;;  %v576_v55 = vld [vmem:[%s1980_s8 + $0x10] sm:$0xff] }
 0x24c   :  { %v280_v61 = vsel %vm279_vm8, %v268_v58, %v274_v49  ;;  %458 = vmatprep.subr.mxu1 %v1422_v62  ;;  %1260 = vmatprep.subr.mxu0 %v1422_v62  ;;  %v582_v49 = vld [vmem:[%s1980_s8 + $0x40] sm:$0xff] }
 0x24d   :  { %v290_v63 = vmul.f32 %v1108_v52, %v280_v61  ;;  %459 = vmatpush1.msra.mxu1 %v291_v56  ;;  %1261 = vmatpush3.msra.mxu0 %v587_v44  ;;  %v579_v52 = vld [vmem:[%s1980_s8 + $0x28] sm:$0xff] }
 0x24e   :  { %460 = vmatprep.subr.mxu1 %v1422_v62  ;;  %1262 = vmatprep.subr.mxu0 %v1422_v62  ;;  %v575_v56 = vld [vmem:[%s1980_s8 + $0x8] sm:$0xff] }
 0x24f   :  { %461 = vmatpush1.msra.mxu1 %v290_v63  ;;  %v243_v1 = vpop.permute.xlu1 %242  ;;  %1263 = vmatpush3.msra.mxu0 %v586_v45  ;;  %v823_v45 = vld [vmem:[%s1983_s12] sm:$0xff] }
 0x250   :  { %v255_v4 = vsel %vm254_vm9, %v243_v1, %v249_v57  ;;  %462 = vmatprep.subr.mxu1 %v1422_v62  ;;  %1264 = vmatprep.subr.mxu0 %v1422_v62  ;;  %v574_v57 = vld [vmem:[%s1980_s8] sm:$0xff]  ;;  %s1443_s8 = smov 120  }
 0x251   :  { %v265_v6 = vmul.f32 %v1106_v59, %v255_v4  ;;  %463 = vmatpush1.msra.mxu1 %v266_v0  ;;  %1265 = vmatpush3.msra.mxu0 %v585_v46  ;;  %v822_v46 = vld [vmem:[%s1984_s11] sm:$0xff] }
 0x252   :  { %464 = vmatprep.subr.mxu1 %v1422_v62  ;;  %1266 = vmatprep.subr.mxu0 %v1422_v62 }
 0x253   :  { %465 = vmatpush1.msra.mxu1 %v265_v6  ;;  %v219_v8 = vpop.permute.xlu1 %218  ;;  %1267 = vmatpush3.msra.mxu0 %v584_v47 }
 0x254   :  { %v231_v11 = vsel %vm230_vm10, %v219_v8, %v225_v5  ;;  %466 = vmatprep.subr.mxu1 %v1422_v62  ;;  %1268 = vmatprep.subr.mxu0 %v1422_v62 }
 0x255   :  { %v240_v12 = vmul.f32 %v1104_v2, %v231_v11  ;;  %467 = vmatpush1.msra.mxu1 %v241_v7  ;;  %1269 = vmatpush3.msra.mxu0 %v583_v48 }
 0x256   :  { %468 = vmatprep.subr.mxu1 %v1422_v62  ;;  %1270 = vmatprep.subr.mxu0 %v1422_v62 }
 0x257   :  { %469 = vmatpush1.msra.mxu1 %v240_v12  ;;  %v393_v15 = vpop.permute.xlu1 %392  ;;  %1271 = vmatpush3.msra.mxu0 %v582_v49 }
 0x258   :  { %v405_v16 = vsel %vm404_vm11, %v393_v15, %v399_v14  ;;  %498 = vmatprep.subr.mxu1 %v1422_v62  ;;  %1272 = vmatprep.subr.mxu0 %v1422_v62 }
 0x259   :  { %v415_v17 = vmul.f32 %v1118_v9, %v405_v16  ;;  %499 = vmatpush2.msra.mxu1 %v416_v13  ;;  %1273 = vmatpush3.msra.mxu0 %v581_v50 }
 0x25a   :  { %500 = vmatprep.subr.mxu1 %v1422_v62  ;;  %1274 = vmatprep.subr.mxu0 %v1422_v62 }
 0x25b   :  { %501 = vmatpush2.msra.mxu1 %v415_v17  ;;  %1275 = vmatpush3.msra.mxu0 %v580_v51  ;;  %v1834_v17 = vld [vmem:[%s1981_s10 + $0x8] ss:$0 sm:$0xff] }
 0x25c   :  { %503 = vmatmul.mubr.f32.vlgmr.msra.gmra.mxu1 %v417_v18  ;;  %1291 = vmatprep.subr.mxu1 %v1422_v62  ;;  %v1839_v18 = vld [vmem:[%s1981_s10 + $0x7] ss:$0 sm:$0xff] }
 0x25d   :  { %1120 = vmatprep.mubr.msk.f32.mxu1 %vm425_vm3, %v420_v19  ;;  %1276 = vmatprep.subr.mxu0 %v1422_v62 }
 0x25e   :  { %1277 = vmatpush3.msra.mxu0 %v579_v52 }
 0x25f   :  { %1278 = vmatprep.subr.mxu0 %v1422_v62 }
 0x260   :  { %508 = vmatmul.mubr.f32.gmra.mxu1 %v419_v20  ;;  %1279 = vmatpush3.msra.mxu0 %v578_v53 }
 0x261   :  { %1121 = vmatprep.mubr.msk.f32.mxu1 %vm425_vm3, %v422_v21  ;;  %1280 = vmatprep.subr.mxu0 %v1422_v62 }
 0x262   :  { %1281 = vmatpush3.msra.mxu0 %v577_v54 }
 0x263   :  { %1282 = vmatprep.subr.mxu0 %v1422_v62 }
 0x264   :  { %513 = vmatmul.mubr.f32.gmra.mxu1 %v421_v22  ;;  %1283 = vmatpush3.msra.mxu0 %v576_v55  ;;  %v1845_v22 = vld [vmem:[%s1981_s10 + $0x6] ss:$0 sm:$0xff] }
 0x265   :  { %1122 = vmatprep.mubr.msk.f32.mxu1 %vm425_vm3, %v424_v23  ;;  %1284 = vmatprep.subr.mxu0 %v1422_v62 }
 0x266   :  { %1285 = vmatpush3.msra.mxu0 %v575_v56 }
 0x267   :  { %1286 = vmatprep.subr.mxu0 %v1422_v62 }
 0x268   :  { %518 = vmatmul.mubr.f32.gmra.mxu1 %v423_v24  ;;  %1287 = vmatpush3.msra.mxu0 %v574_v57  ;;  %v1851_v24 = vld [vmem:[%s1981_s10 + $0x5] ss:$0 sm:$0xff] }
 0x269   :  { %1309 = vmatprep.mubr.msk.f32.mxu1 %vm1442_vm14, %v1422_v62 }
 0x31c   :  { %v504_v25 = vpop.f32.mrf.mxu1 }
 0x31e   :  { %v506_v26 = vpop.f32.mrf.mxu1 }
 0x320   :  { %v509_v27 = vpop.f32.mrf.mxu1 }
 0x321   :  { %524 = vrot.lane.b32.xlu1 %v509_v27, %s1439_s26  ;;  %s1447_s26 = smov 9  }
 0x322   :  { %v511_v28 = vpop.f32.mrf.mxu1 }
 0x324   :  { %v514_v29 = vpop.f32.mrf.mxu1 }
 0x325   :  { %528 = vrot.lane.b32.xlu0 %v514_v29, %s1440_s27  ;;  %s1448_s27 = smov 8  }
 0x326   :  { %v516_v30 = vpop.f32.mrf.mxu1 }
 0x327   :  { %v1861_v30 = vld [vmem:[%s1981_s10 + $0x3] ss:$0 sm:$0xff] }
 0x328   :  { %v519_v31 = vpop.f32.mrf.mxu1 }
 0x329   :  { %532 = vrot.lane.b32.xlu1 %v519_v31, %s1441_s0 }
 0x32a   :  { %v521_v32 = vpop.f32.mrf.mxu1 }
 0x32b   :  { %v1866_v32 = vld [vmem:[%s1981_s10 + $0x2] ss:$0 sm:$0xff] }
 0x393   :  { %v525_v33 = vpop.permute.xlu1 %524 }
 0x394   :  { %v535_v35 = vsel %vm147_vm0, %v504_v25, %v525_v33  ;;  %vm748_vm0 = vcmask 588800  }
 0x397   :  { %v529_v34 = vpop.permute.xlu0 %528 }
 0x398   :  { %v537_v36 = vsel %vm536_vm12, %v535_v35, %v529_v34  ;;  %v1874_v34 = vld [vmem:[%s1981_s10 + $0x1] ss:$0 sm:$0xff] }
 0x39b   :  { %v533_v37 = vpop.permute.xlu1 %532 }
 0x39c   :  { %v1746_v38 = vsel %vm538_vm13, %v537_v36, %v533_v37  ;;  %v1880_v37 = vld [vmem:[%s1981_s10] ss:$0 sm:$0xff] }
 0x39d   :  { %542 = vadd.xlane.f32.xlu0 %v1746_v38  ;;  %v545_v39 = vmul.f32 %v1746_v38, %v1746_v38 }
 0x39f   :  { %546 = vadd.xlane.f32.xlu1 %v545_v39 }
 0x3b0   :  { %563 = vperm.xlu1 %1400, %v541_v40  }
 0x3b3   :  { %557 = vperm.xlu0 %1399, %v540_v41   ;;  %v747_v41 = vld [vmem:[%s1982_s9] sm:$0xff] }
 0x426   :  { %v543_v58 = vpop.xlane.xlu0 %542 }
 0x427   :  { %v544_v59 = vmul.f32 0.0078125, %v543_v58 }
 0x428   :  { %v547_v60 = vpop.xlane.xlu1 %546 }
 0x429   :  { %v549_v61 = vmul.f32 %v544_v59, %v544_v59  ;;  %v548_v63 = vmul.f32 0.0078125, %v547_v60  ;;  %v551_v2 = vsub.f32 %v1746_v38, %v544_v59 }
 0x42b   :  { %v550_v0 = vsub.f32 %v548_v63, %v549_v61 }
 0x42c   :  { %v564_v7 = vpop.permute.xlu1 %563 }
 0x42d   :  { %v552_v1 = vadd.f32 1e-05, %v550_v0 }
 0x42e   :  { %v558_v5 = vpop.permute.xlu0 %557 }
 0x42f   :  { %1409 = vrsqrt.f32 %v552_v1 }
 0x43c   :  { %v1410_v3 = vpop.eup %1409 }
 0x43d   :  { %v554_v4 = vmul.f32 %v1410_v3, %v551_v2  ;;  %v880_v3 = vld [vmem:[%s1985_s13] sm:$0xff] }
 0x43f   :  { %v560_v6 = vmul.f32 %v558_v5, %v554_v4 }
 0x441   :  { %v566_v8 = vadd.f32 %v564_v7, %v560_v6 }
 0x443   :  { %v568_v9 = vmul.f32 1.442695, %v566_v8  ;;  %vm567_vm15 = vcmp.gt.f32.partialorder %v566_v8, 0.0 }
 0x445   :  { %1411 = vpow2.f32 %v568_v9 }
 0x452   :  { %v1412_v10 = vpop.eup %1411 }
 0x453   :  { %v1123_v11 = vadd.f32 -1.0, %v1412_v10 }
 0x455   :  { %v571_v12 = vmul.f32 1.6732632, %v1123_v11 }
 0x457   :  { %v572_v13 = vsel %vm567_vm15, %v566_v8, %v571_v12 }
 0x458   :  { %v573_v14 = vmul.f32 1.050701, %v572_v13 }
 0x45a   :  { %1289 = vmatmul.mubr.f32.vlgmr.msra.gmra.mxu0 %v573_v14 }
 0x51a   :  { %v656_v15 = vpop.f32.mrf.mxu0 }
 0x51b   :  { %725 = vrot.lane.b32.xlu1 %v656_v15, %s1443_s8  ;;  %736 = vrot.lane.b32.xlu0 %v656_v15, %s1444_s23 }
 0x51c   :  { %v1290_v16 = vpop.f32.mrf.mxu0 }
 0x51f   :  { %703 = vrot.lane.b32.xlu1 %v656_v15, %s1430_s20  ;;  %714 = vrot.lane.b32.xlu0 %v656_v15, %s1445_s24 }
 0x523   :  { %681 = vrot.lane.b32.xlu1 %v656_v15, %s1446_s25  ;;  %692 = vrot.lane.b32.xlu0 %v656_v15, %s1427_s17 }
 0x527   :  { %660 = vrot.lane.b32.xlu1 %v656_v15, %s1447_s26  ;;  %670 = vrot.lane.b32.xlu0 %v656_v15, %s1448_s27 }
 0x58d   :  { %v726_v19 = vpop.permute.xlu1 %725  ;;  %v737_v20 = vpop.permute.xlu0 %736 }
 0x58e   :  { %v746_v21 = vmul.f32 %v1834_v17, %v737_v20  ;;  %v735_v23 = vmul.f32 %v1839_v18, %v726_v19 }
 0x590   :  { %1292 = vmatpush3.msra.mxu1 %v746_v21 }
 0x591   :  { %v704_v25 = vpop.permute.xlu1 %703  ;;  %1293 = vmatprep.subr.mxu1 %v1422_v62  ;;  %v715_v26 = vpop.permute.xlu0 %714 }
 0x592   :  { %v724_v27 = vmul.f32 %v1845_v22, %v715_v26  ;;  %1294 = vmatpush3.msra.mxu1 %v735_v23  ;;  %v713_v28 = vmul.f32 %v1851_v24, %v704_v25  ;;  %v881_v23 = vld [vmem:[%s1985_s13 + $0x8] sm:$0xff]  ;;  %v882_v25 = vld [vmem:[%s1985_s13 + $0x10] sm:$0xff]  ;;  %v883_v26 = vld [vmem:[%s1985_s13 + $0x18] sm:$0xff] }
 0x593   :  { %1295 = vmatprep.subr.mxu1 %v1422_v62 }
 0x594   :  { %1296 = vmatpush3.msra.mxu1 %v724_v27 }
 0x595   :  { %v682_v29 = vpop.permute.xlu1 %681  ;;  %1297 = vmatprep.subr.mxu1 %v1422_v62  ;;  %v693_v31 = vpop.permute.xlu0 %692 }
 0x596   :  { %1298 = vmatpush3.msra.mxu1 %v713_v28  ;;  %v702_v33 = vmul.f32 %v1861_v30, %v693_v31  ;;  %v691_v36 = vmul.f32 %v1866_v32, %v682_v29 }
 0x597   :  { %1299 = vmatprep.subr.mxu1 %v1422_v62 }
 0x598   :  { %1300 = vmatpush3.msra.mxu1 %v656_v15 }
 0x599   :  { %1301 = vmatprep.subr.mxu1 %v1422_v62  ;;  %v671_v35 = vpop.permute.xlu0 %670  ;;  %v661_v38 = vpop.permute.xlu1 %660 }
 0x59a   :  { %1302 = vmatpush3.msra.mxu1 %v702_v33  ;;  %v680_v39 = vmul.f32 %v1874_v34, %v671_v35  ;;  %v669_v40 = vmul.f32 %v1880_v37, %v661_v38  ;;  %v1017_v33 = vld [vmem:[%s1986_s14] sm:$0xff] }
 0x59b   :  { %1303 = vmatprep.subr.mxu1 %v1422_v62  ;;  %1368 = vmatprep.mubr.f32.mxu0 %v1017_v33 }
 0x59c   :  { %1304 = vmatpush3.msra.mxu1 %v691_v36 }
 0x59d   :  { %1305 = vmatprep.subr.mxu1 %v1422_v62 }
 0x59e   :  { %1306 = vmatpush3.msra.mxu1 %v680_v39 }
 0x59f   :  { %1307 = vmatprep.subr.mxu1 %v1422_v62 }
 0x5a0   :  { %1308 = vmatpush3.msra.mxu1 %v669_v40 }
 0x5a1   :  { %1310 = vmatmul.mubr.msk.f32.vlgmr.msra.gmra.mxu1 %vm748_vm0, %v747_v41 }
 0x5a2   :  { %1330 = vmatprep.mubr.msk.f32.mxu1 %vm748_vm0, %v880_v3 }
 0x661   :  { %v818_v42 = vpop.f32.mrf.mxu1 }
 0x662   :  { %824 = vadd.xlane.f32.xlu0 %v818_v42  ;;  %v827_v43 = vmul.f32 %v818_v42, %v818_v42 }
 0x663   :  { %v1311_v44 = vpop.f32.mrf.mxu1 }
 0x664   :  { %828 = vadd.xlane.f32.xlu1 %v827_v43 }
 0x675   :  { %845 = vperm.xlu1 %1400, %v823_v45  }
 0x678   :  { %839 = vperm.xlu0 %1399, %v822_v46  }
 0x6eb   :  { %v825_v47 = vpop.xlane.xlu0 %824 }
 0x6ec   :  { %v826_v62 = vmul.f32 0.0078125, %v825_v47 }
 0x6ed   :  { %v829_v48 = vpop.xlane.xlu1 %828 }
 0x6ee   :  { %v831_v49 = vmul.f32 %v826_v62, %v826_v62  ;;  %v830_v50 = vmul.f32 0.0078125, %v829_v48  ;;  %v833_v53 = vsub.f32 %v818_v42, %v826_v62 }
 0x6f0   :  { %v832_v51 = vsub.f32 %v830_v50, %v831_v49 }
 0x6f1   :  { %v846_v58 = vpop.permute.xlu1 %845 }
 0x6f2   :  { %v834_v52 = vadd.f32 1e-05, %v832_v51 }
 0x6f3   :  { %v840_v56 = vpop.permute.xlu0 %839 }
 0x6f4   :  { %1413 = vrsqrt.f32 %v834_v52 }
 0x701   :  { %v1414_v54 = vpop.eup %1413 }
 0x702   :  { %v836_v55 = vmul.f32 %v1414_v54, %v833_v53 }
 0x704   :  { %v842_v57 = vmul.f32 %v840_v56, %v836_v55 }
 0x706   :  { %v848_v59 = vadd.f32 %v846_v58, %v842_v57 }
 0x708   :  { %v850_v60 = vmul.f32 1.442695, %v848_v59  ;;  %vm849_vm1 = vcmp.gt.f32.partialorder %v848_v59, 0.0 }
 0x70a   :  { %1415 = vpow2.f32 %v850_v60 }
 0x717   :  { %v1416_v61 = vpop.eup %1415 }
 0x718   :  { %v1140_v63 = vadd.f32 -1.0, %v1416_v61 }
 0x71a   :  { %v853_v0 = vmul.f32 1.6732632, %v1140_v63 }
 0x71c   :  { %v854_v1 = vsel %vm849_vm1, %v848_v59, %v853_v0 }
 0x71d   :  { %v855_v2 = vmul.f32 1.050701, %v854_v1 }
 0x71f   :  { %874 = vrot.lane.b32.xlu1 %v855_v2, %s1443_s8  ;;  %877 = vrot.lane.b32.xlu0 %v855_v2, %s1444_s23 }
 0x723   :  { %868 = vrot.lane.b32.xlu1 %v855_v2, %s1430_s20  ;;  %871 = vrot.lane.b32.xlu0 %v855_v2, %s1445_s24 }
 0x727   :  { %862 = vrot.lane.b32.xlu1 %v855_v2, %s1446_s25  ;;  %865 = vrot.lane.b32.xlu0 %v855_v2, %s1427_s17 }
 0x72b   :  { %856 = vrot.lane.b32.xlu1 %v855_v2, %s1447_s26  ;;  %859 = vrot.lane.b32.xlu0 %v855_v2, %s1448_s27 }
 0x791   :  { %v875_v4 = vpop.permute.xlu1 %874  ;;  %v878_v5 = vpop.permute.xlu0 %877 }
 0x792   :  { %v879_v6 = vmul.f32 %v1834_v17, %v878_v5  ;;  %v876_v7 = vmul.f32 %v1839_v18, %v875_v4 }
 0x794   :  { %1312 = vmatprep.subr.mxu1 %v879_v6 }
 0x795   :  { %v869_v8 = vpop.permute.xlu1 %868  ;;  %1313 = vmatpush3.msra.mxu1 %v879_v6  ;;  %v872_v9 = vpop.permute.xlu0 %871 }
 0x796   :  { %v873_v10 = vmul.f32 %v1845_v22, %v872_v9  ;;  %1314 = vmatprep.subr.mxu1 %v876_v7  ;;  %v870_v11 = vmul.f32 %v1851_v24, %v869_v8 }
 0x797   :  { %1315 = vmatpush3.msra.mxu1 %v876_v7 }
 0x798   :  { %1316 = vmatprep.subr.mxu1 %v873_v10 }
 0x799   :  { %v863_v12 = vpop.permute.xlu1 %862  ;;  %1317 = vmatpush3.msra.mxu1 %v873_v10  ;;  %v866_v13 = vpop.permute.xlu0 %865 }
 0x79a   :  { %1318 = vmatprep.subr.mxu1 %v870_v11  ;;  %v867_v14 = vmul.f32 %v1861_v30, %v866_v13  ;;  %v864_v16 = vmul.f32 %v1866_v32, %v863_v12 }
 0x79b   :  { %1319 = vmatpush3.msra.mxu1 %v870_v11 }
 0x79c   :  { %1320 = vmatprep.subr.mxu1 %v855_v2 }
 0x79d   :  { %1321 = vmatpush3.msra.mxu1 %v855_v2  ;;  %v860_v15 = vpop.permute.xlu0 %859  ;;  %v857_v19 = vpop.permute.xlu1 %856 }
 0x79e   :  { %1322 = vmatprep.subr.mxu1 %v867_v14  ;;  %v861_v20 = vmul.f32 %v1874_v34, %v860_v15  ;;  %v858_v21 = vmul.f32 %v1880_v37, %v857_v19 }
 0x79f   :  { %1323 = vmatpush3.msra.mxu1 %v867_v14 }
 0x7a0   :  { %1324 = vmatprep.subr.mxu1 %v864_v16 }
 0x7a1   :  { %1325 = vmatpush3.msra.mxu1 %v864_v16 }
 0x7a2   :  { %1326 = vmatprep.subr.mxu1 %v861_v20 }
 0x7a3   :  { %1327 = vmatpush3.msra.mxu1 %v861_v20 }
 0x7a4   :  { %1328 = vmatprep.subr.mxu1 %v858_v21 }
 0x7a5   :  { %1329 = vmatpush3.msra.mxu1 %v858_v21 }
 0x7a6   :  { %1331 = vmatmul.mubr.msk.f32.vlgmr.msra.gmra.mxu1 %vm748_vm0, %v881_v23 }
 0x7a7   :  { %1333 = vmatprep.mubr.msk.f32.mxu1 %vm748_vm0, %v882_v25 }
 0x7aa   :  { %1334 = vmatmul.mubr.msk.f32.gmra.mxu1 %vm748_vm0, %v883_v26 }
 0x866   :  { %v1332_v27 = vpop.f32.mrf.mxu1 }
 0x868   :  { %v1929_v28 = vpop.f32.mrf.mxu1 }
 0x86a   :  { %v1335_v29 = vpop.f32.mrf.mxu1 }
 0x86b   :  { %1011 = vrot.lane.b32.xlu1 %v1335_v29, %s1448_s27  ;;  %1014 = vrot.lane.b32.xlu0 %v1335_v29, %s1427_s17 }
 0x86c   :  { %1336 = vmatprep.subr.mxu0 %v1335_v29  ;;  %v972_v31 = vpop.f32.mrf.mxu1 }
 0x86d   :  { %1337 = vmatpush3.msra.mxu0 %v1335_v29 }
 0x86f   :  { %1008 = vrot.lane.b32.xlu0 %v1335_v29, %s1447_s26  ;;  %1005 = vrot.lane.b32.xlu1 %v972_v31, %s1430_s20 }
 0x873   :  { %1002 = vrot.lane.b32.xlu0 %v972_v31, %s1446_s25  ;;  %999 = vrot.lane.b32.xlu1 %v972_v31, %s1448_s27 }
 0x877   :  { %996 = vrot.lane.b32.xlu0 %v1332_v27, %s1443_s8  ;;  %993 = vrot.lane.b32.xlu1 %v1332_v27, %s1445_s24 }
 0x87b   :  { %990 = vrot.lane.b32.xlu0 %v1332_v27, %s1427_s17  ;;  %987 = vrot.lane.b32.xlu1 %v1929_v28, %s1444_s23 }
 0x87f   :  { %984 = vrot.lane.b32.xlu0 %v1929_v28, %s1443_s8  ;;  %981 = vrot.lane.b32.xlu1 %v1929_v28, %s1430_s20 }
 0x8dd   :  { %v1012_v35 = vpop.permute.xlu1 %1011  ;;  %v1015_v36 = vpop.permute.xlu0 %1014 }
 0x8de   :  { %v1016_v38 = vmul.f32 %v1861_v30, %v1015_v36  ;;  %v1013_v39 = vmul.f32 %v1874_v34, %v1012_v35 }
 0x8e0   :  { %1338 = vmatprep.subr.mxu0 %v1016_v38 }
 0x8e1   :  { %v1009_v40 = vpop.permute.xlu0 %1008  ;;  %1339 = vmatpush3.msra.mxu0 %v1016_v38  ;;  %v1006_v41 = vpop.permute.xlu1 %1005 }
 0x8e2   :  { %v1010_v42 = vmul.f32 %v1880_v37, %v1009_v40  ;;  %1340 = vmatprep.subr.mxu0 %v1013_v39  ;;  %v1007_v43 = vmul.f32 %v1851_v24, %v1006_v41 }
 0x8e3   :  { %1341 = vmatpush3.msra.mxu0 %v1013_v39 }
 0x8e4   :  { %1342 = vmatprep.subr.mxu0 %v1010_v42 }
 0x8e5   :  { %1343 = vmatpush3.msra.mxu0 %v1010_v42  ;;  %v1003_v44 = vpop.permute.xlu0 %1002  ;;  %v1000_v45 = vpop.permute.xlu1 %999 }
 0x8e6   :  { %1344 = vmatprep.subr.mxu0 %v1007_v43  ;;  %v1004_v46 = vmul.f32 %v1866_v32, %v1003_v44  ;;  %v1001_v48 = vmul.f32 %v1874_v34, %v1000_v45 }
 0x8e7   :  { %1345 = vmatpush3.msra.mxu0 %v1007_v43 }
 0x8e8   :  { %1346 = vmatprep.subr.mxu0 %v972_v31 }
 0x8e9   :  { %v997_v47 = vpop.permute.xlu0 %996  ;;  %1347 = vmatpush3.msra.mxu0 %v972_v31  ;;  %v994_v62 = vpop.permute.xlu1 %993 }
 0x8ea   :  { %1348 = vmatprep.subr.mxu0 %v1004_v46  ;;  %v998_v37 = vmul.f32 %v1839_v18, %v997_v47  ;;  %v995_v50 = vmul.f32 %v1845_v22, %v994_v62 }
 0x8eb   :  { %1349 = vmatpush3.msra.mxu0 %v1004_v46 }
 0x8ec   :  { %1350 = vmatprep.subr.mxu0 %v1001_v48 }
 0x8ed   :  { %v991_v49 = vpop.permute.xlu0 %990  ;;  %1351 = vmatpush3.msra.mxu0 %v1001_v48  ;;  %v988_v51 = vpop.permute.xlu1 %987 }
 0x8ee   :  { %1352 = vmatprep.subr.mxu0 %v998_v37  ;;  %v992_v32 = vmul.f32 %v1861_v30, %v991_v49  ;;  %v989_v34 = vmul.f32 %v1834_v17, %v988_v51  ;;  %v1018_v30 = vld [vmem:[%s1986_s14 + $0x8] sm:$0xf] }
 0x8ef   :  { %1353 = vmatpush3.msra.mxu0 %v998_v37 }
 0x8f0   :  { %1354 = vmatprep.subr.mxu0 %v995_v50 }
 0x8f1   :  { %1355 = vmatpush3.msra.mxu0 %v995_v50  ;;  %v985_v52 = vpop.permute.xlu0 %984  ;;  %v982_v53 = vpop.permute.xlu1 %981 }
 0x8f2   :  { %1356 = vmatprep.subr.mxu0 %v1332_v27  ;;  %v986_v54 = vmul.f32 %v1839_v18, %v985_v52  ;;  %v983_v22 = vmul.f32 %v1851_v24, %v982_v53 }
 0x8f3   :  { %1357 = vmatpush3.msra.mxu0 %v1332_v27 }
 0x8f4   :  { %1358 = vmatprep.subr.mxu0 %v992_v32 }
 0x8f5   :  { %1359 = vmatpush3.msra.mxu0 %v992_v32 }
 0x8f6   :  { %1360 = vmatprep.subr.mxu0 %v989_v34 }
 0x8f7   :  { %1361 = vmatpush3.msra.mxu0 %v989_v34 }
 0x8f8   :  { %1362 = vmatprep.subr.mxu0 %v986_v54 }
 0x8f9   :  { %1363 = vmatpush3.msra.mxu0 %v986_v54 }
 0x8fa   :  { %1364 = vmatprep.subr.mxu0 %v983_v22 }
 0x8fb   :  { %1365 = vmatpush3.msra.mxu0 %v983_v22 }
 0x8fc   :  { %1366 = vmatprep.subr.mxu0 %v1929_v28 }
 0x8fd   :  { %1367 = vmatpush3.msra.mxu0 %v1929_v28 }
 0x8fe   :  { %1369 = vmatmul.mubr.f32.vlgmr.msra.gmra.mxu0 %v1018_v30 }
 0x9be   :  { %v1370_v17 = vpop.f32.mrf.mxu0 }
 0x9bf   :  { %1417 = vtanh.f32 %v1370_v17 }
 0x9c0   :  { %v1085_v18 = vpop.f32.mrf.mxu0 }
 0x9c1   :  { %1419 = vtanh.f32 %v1085_v18 }
 0x9cc   :  { %v1418_v55 = vpop.eup %1417 }
 0x9cd   :  { %1097 = vst [vmem:[%s1987_s15 + $0x8] sm:$0xf] %v1418_v55 }
 0x9ce   :  { %v1420_v24 = vpop.eup %1419 }
 0x9cf   :  { %1096 = vst [vmem:[%s1987_s15] sm:$0xff] %v1420_v24 }

</bundles_post_ra>
